<compile_context>
chip_gen: v6e
topology: v6e:2x2x1
jax: 0.10.0
libtpu: 0.0.40
codegen_flags: <defaults>
</compile_context>

<pallas_src>
import functools

import jax
import jax.numpy as jnp
from jax.experimental import pallas as pl
from jax.experimental.pallas import tpu as pltpu

OUT_LANES = 128  # lane-dense output slab width (one full lane group)


def _round_up(x, m):
    return (x + m - 1) // m * m


def _dann_kernel(x_ref,
                 w1_ref, b1_ref, w2_ref, b2_ref, w3_ref, b3_ref,
                 whead_ref, bhead_ref, wd2_ref, bd2_ref,
                 out_ref, *, num_classes, d_hidden):
    bf16 = jnp.bfloat16

    # ---- FeatureExtractor: 310 -> 512 -> 512 -> 128, ReLU after each ----
    # TODO(synk): K=310 is not a lane multiple; Mosaic lane-pads it. Could
    # zero-pad x / w1 to K=384 in the wrapper for marginally cleaner K-steps.
    h = jnp.dot(x_ref[...], w1_ref[...], preferred_element_type=jnp.float32)
    h = jnp.maximum(h + b1_ref[...], 0.0)

    h = jnp.dot(h.astype(bf16), w2_ref[...], preferred_element_type=jnp.float32)
    h = jnp.maximum(h + b2_ref[...], 0.0)

    f = jnp.dot(h.astype(bf16), w3_ref[...], preferred_element_type=jnp.float32)
    f = jnp.maximum(f + b3_ref[...], 0.0)

    # ---- Fused head: one MXU pass for [DomainDiscriminator.fc1 | Classifier.fc] ----
    # whead columns: [0:d_hidden) = Wd1, [d_hidden:d_hidden+nc) = Wc, rest = 0.
    t = jnp.dot(f.astype(bf16), whead_ref[...], preferred_element_type=jnp.float32)
    t = t + bhead_ref[...]
    d = jnp.maximum(t[:, :d_hidden], 0.0)                    # discriminator hidden
    cls_slab = t[:, d_hidden:d_hidden + OUT_LANES]           # aligned 128-wide slice:
                                                             # cols [0:nc)=logits, rest=0

    # ---- DomainDiscriminator.fc2 + sigmoid (EUP exp + approx reciprocal) ----
    z = jnp.dot(d.astype(bf16), wd2_ref[...], preferred_element_type=jnp.float32)
    z = z + bd2_ref[...]                                     # (TILE_B, 1)
    dom = pl.reciprocal(1.0 + jnp.exp(-z), approx=True)

    # ---- Lane-dense output slab: columns [0:nc)=cls, [nc]=dom, rest=0 ----
    col = jax.lax.broadcasted_iota(jnp.int32, cls_slab.shape, 1)
    out_ref[...] = jnp.where(col == num_classes, dom, cls_slab)


def prepare_params(p, num_classes=3):
    """Cast weights to bf16 and build the fused [Wd1 | Wc] head. Call once."""
    bf16 = jnp.bfloat16
    feat_dim, d_hidden = p["wd1"].shape                      # (128, 128)
    assert num_classes + 1 <= OUT_LANES
    head_width = d_hidden + OUT_LANES                        # 256 (2 lane groups)

    whead = jnp.zeros((feat_dim, head_width), bf16)
    whead = whead.at[:, :d_hidden].set(p["wd1"].astype(bf16))
    whead = whead.at[:, d_hidden:d_hidden + num_classes].set(p["wc"].astype(bf16))
    bhead = jnp.zeros((1, head_width), jnp.float32)
    bhead = bhead.at[:, :d_hidden].set(p["bd1"])
    bhead = bhead.at[:, d_hidden:d_hidden + num_classes].set(p["bc"])

    return dict(
        w1=p["w1"].astype(bf16), b1=p["b1"],
        w2=p["w2"].astype(bf16), b2=p["b2"],
        w3=p["w3"].astype(bf16), b3=p["b3"],
        whead=whead, bhead=bhead,
        wd2=p["wd2"].astype(bf16), bd2=p["bd2"],
        num_classes=num_classes, d_hidden=d_hidden,
    )


def dann_forward(x, prepared, *, tile_b=None):
    """x: (B, input_dim) float32. prepared: output of prepare_params."""
    B, in_dim = x.shape
    nc = prepared["num_classes"]
    dh = prepared["d_hidden"]

    # Tile size: biggest that comfortably fits VMEM (<=1024 rows works on
    # v5e/v6e/v7x with resident bf16 weights + double-buffered x/output tiles).
    if tile_b is None:
        tile_b = min(1024, _round_up(B, 8))
    tile_b = max(8, _round_up(tile_b, 8))
    b_pad = _round_up(B, tile_b)

    xb = x.astype(jnp.bfloat16)
    if b_pad != B:
        xb = jnp.pad(xb, ((0, b_pad - B), (0, 0)))

    grid = (b_pad // tile_b,)

    def _const(i):  # weights/biases: same block every step -> VMEM resident
        return (0, 0)

    in_specs = [
        pl.BlockSpec((tile_b, in_dim), lambda i: (i, 0)),     # x tile (pipelined)
        pl.BlockSpec(prepared["w1"].shape, _const),
        pl.BlockSpec(prepared["b1"].shape, _const),
        pl.BlockSpec(prepared["w2"].shape, _const),
        pl.BlockSpec(prepared["b2"].shape, _const),
        pl.BlockSpec(prepared["w3"].shape, _const),
        pl.BlockSpec(prepared["b3"].shape, _const),
        pl.BlockSpec(prepared["whead"].shape, _const),
        pl.BlockSpec(prepared["bhead"].shape, _const),
        pl.BlockSpec(prepared["wd2"].shape, _const),
        pl.BlockSpec(prepared["bd2"].shape, _const),
    ]
    out_specs = pl.BlockSpec((tile_b, OUT_LANES), lambda i: (i, 0))

    kernel = functools.partial(_dann_kernel, num_classes=nc, d_hidden=dh)

    slab = pl.pallas_call(
        kernel,
        grid=grid,
        in_specs=in_specs,
        out_specs=out_specs,
        out_shape=jax.ShapeDtypeStruct((b_pad, OUT_LANES), jnp.float32),
        compiler_params=pltpu.CompilerParams(
            dimension_semantics=("parallel",)),   # megacore on v7x
    )(xb, prepared["w1"], prepared["b1"], prepared["w2"], prepared["b2"],
      prepared["w3"], prepared["b3"], prepared["whead"], prepared["bhead"],
      prepared["wd2"], prepared["bd2"])

    # TODO(synk): for tiny-batch serving, persist weights in VMEM across calls
    # (cross-call prefetch via pl.ANY + make_async_copy) to amortize weight DMA.
    cls = slab[:B, :nc]
    dom = slab[:B, nc:nc + 1]
    return cls, dom


def init_params(key, input_dim=310, hidden_dim=512, feat_dim=128, num_classes=3):
    """Deterministic synthetic init (PyTorch-Linear-like uniform scale)."""
    keys = jax.random.split(key, 12)

    def linear(kw, kb, fan_in, fan_out):
        bound = 1.0 / jnp.sqrt(float(fan_in))
        w = jax.random.uniform(kw, (fan_in, fan_out), jnp.float32, -bound, bound)
        b = jax.random.uniform(kb, (1, fan_out), jnp.float32, -bound, bound)
        return w, b

    w1, b1 = linear(keys[0], keys[1], input_dim, hidden_dim)
    w2, b2 = linear(keys[2], keys[3], hidden_dim, hidden_dim)
    w3, b3 = linear(keys[4], keys[5], hidden_dim, feat_dim)
    wc, bc = linear(keys[6], keys[7], feat_dim, num_classes)
    wd1, bd1 = linear(keys[8], keys[9], feat_dim, 128)
    wd2, bd2 = linear(keys[10], keys[11], 128, 1)
    return dict(w1=w1, b1=b1, w2=w2, b2=b2, w3=w3, b3=b3,
                wc=wc, bc=bc, wd1=wd1, bd1=bd1, wd2=wd2, bd2=bd2)


def dann_reference(x, p):
    """Pure-JAX reference with matching precision (bf16 operands, f32 accum)."""
    bf16 = jnp.bfloat16

    def mm(a, w):
        return jnp.dot(a.astype(bf16), w.astype(bf16),
                       preferred_element_type=jnp.float32)

    h = jax.nn.relu(mm(x, p["w1"]) + p["b1"])
    h = jax.nn.relu(mm(h, p["w2"]) + p["b2"])
    f = jax.nn.relu(mm(h, p["w3"]) + p["b3"])
    cls = mm(f, p["wc"]) + p["bc"]
    d = jax.nn.relu(mm(f, p["wd1"]) + p["bd1"])
    dom = jax.nn.sigmoid(mm(d, p["wd2"]) + p["bd2"])
    return cls, dom


if __name__ == "__main__":
    key = jax.random.PRNGKey(0)
    k_x, k_p = jax.random.split(key)

    B, INPUT_DIM, NUM_CLASSES = 24, 310, 3
    x = jax.random.normal(k_x, (B, INPUT_DIM), dtype=jnp.float32)
    raw_params = init_params(k_p, input_dim=INPUT_DIM, num_classes=NUM_CLASSES)
    params = prepare_params(raw_params, num_classes=NUM_CLASSES)

    # tile_b=8 exercises a real multi-step batch grid even at this tiny B
    # (production default is tile_b=1024).
    cls_out, dom_out = dann_forward(x, params, tile_b=8)
    jax.block_until_ready((cls_out, dom_out))

    cls_ref, dom_ref = dann_reference(x, raw_params)
    assert cls_out.shape == (B, NUM_CLASSES) and dom_out.shape == (B, 1)
    assert jnp.allclose(cls_out, cls_ref, atol=2e-3, rtol=2e-3), \
        float(jnp.max(jnp.abs(cls_out - cls_ref)))
    assert jnp.allclose(dom_out, dom_ref, atol=2e-3, rtol=2e-3), \
        float(jnp.max(jnp.abs(dom_out - dom_ref)))

    print("KERNEL_OK")
</pallas_src>

<mosaic_0001>
module attributes {stable_mosaic.version = 11 : i64} {
  func.func @_dann_kernel(%arg0: i32, %arg1: memref<8x310xbf16, #tpu.memory_space<vmem>>, %arg2: memref<310x512xbf16, #tpu.memory_space<vmem>>, %arg3: memref<1x512xf32, #tpu.memory_space<vmem>>, %arg4: memref<512x512xbf16, #tpu.memory_space<vmem>>, %arg5: memref<1x512xf32, #tpu.memory_space<vmem>>, %arg6: memref<512x128xbf16, #tpu.memory_space<vmem>>, %arg7: memref<1x128xf32, #tpu.memory_space<vmem>>, %arg8: memref<128x256xbf16, #tpu.memory_space<vmem>>, %arg9: memref<1x256xf32, #tpu.memory_space<vmem>>, %arg10: memref<128x1xbf16, #tpu.memory_space<vmem>>, %arg11: memref<1x1xf32, #tpu.memory_space<vmem>>, %arg12: memref<8x128xf32, #tpu.memory_space<vmem>>) attributes {dimension_semantics = [#tpu.dimension_semantics<parallel>], iteration_bounds = array<i64: 3>, scalar_prefetch = 0 : i64, scratch_operands = 0 : i64, tpu.core_type = #tpu.core_type<tc>, window_params = [{transform_indices = @transform_0, window_bounds = array<i64: 8, 310>}, {pipeline_mode = #tpu.pipeline_mode<synchronous>, transform_indices = @transform_1, window_bounds = array<i64: 310, 512>}, {pipeline_mode = #tpu.pipeline_mode<synchronous>, transform_indices = @transform_2, window_bounds = array<i64: 1, 512>}, {pipeline_mode = #tpu.pipeline_mode<synchronous>, transform_indices = @transform_3, window_bounds = array<i64: 512, 512>}, {pipeline_mode = #tpu.pipeline_mode<synchronous>, transform_indices = @transform_4, window_bounds = array<i64: 1, 512>}, {pipeline_mode = #tpu.pipeline_mode<synchronous>, transform_indices = @transform_5, window_bounds = array<i64: 512, 128>}, {pipeline_mode = #tpu.pipeline_mode<synchronous>, transform_indices = @transform_6, window_bounds = array<i64: 1, 128>}, {pipeline_mode = #tpu.pipeline_mode<synchronous>, transform_indices = @transform_7, window_bounds = array<i64: 128, 256>}, {pipeline_mode = #tpu.pipeline_mode<synchronous>, transform_indices = @transform_8, window_bounds = array<i64: 1, 256>}, {pipeline_mode = #tpu.pipeline_mode<synchronous>, transform_indices = @transform_9, window_bounds = array<i64: 128, 1>}, {pipeline_mode = #tpu.pipeline_mode<synchronous>, transform_indices = @transform_10, window_bounds = array<i64: 1, 1>}, {transform_indices = @transform_11, window_bounds = array<i64: 8, 128>}]} {
    %c0 = arith.constant 0 : index
    %c0_0 = arith.constant 0 : index
    %0 = vector.load %arg1[%c0, %c0_0] : memref<8x310xbf16, #tpu.memory_space<vmem>>, vector<8x310xbf16>
    %c0_1 = arith.constant 0 : index
    %c0_2 = arith.constant 0 : index
    %1 = vector.load %arg2[%c0_1, %c0_2] : memref<310x512xbf16, #tpu.memory_space<vmem>>, vector<310x512xbf16>
    %cst = arith.constant dense<0.000000e+00> : vector<8x512xf32>
    %2 = tpu.matmul %0, %1, %cst {dimension_numbers = #tpu.dot_dimension_numbers<[1], [0], [0], [1], [0, 0, 1, 1], [], []>} : vector<8x310xbf16>, vector<310x512xbf16>, vector<8x512xf32> -> vector<8x512xf32>
    %c0_3 = arith.constant 0 : index
    %c0_4 = arith.constant 0 : index
    %3 = vector.load %arg3[%c0_3, %c0_4] : memref<1x512xf32, #tpu.memory_space<vmem>>, vector<1x512xf32>
    %4 = vector.broadcast %3 : vector<1x512xf32> to vector<8x512xf32>
    %5 = arith.addf %2, %4 : vector<8x512xf32>
    %cst_5 = arith.constant 0.000000e+00 : f32
    %6 = vector.broadcast %cst_5 : f32 to vector<8x512xf32>
    %7 = arith.maximumf %5, %6 : vector<8x512xf32>
    %8 = arith.truncf %7 : vector<8x512xf32> to vector<8x512xbf16>
    %c0_6 = arith.constant 0 : index
    %c0_7 = arith.constant 0 : index
    %9 = vector.load %arg4[%c0_6, %c0_7] : memref<512x512xbf16, #tpu.memory_space<vmem>>, vector<512x512xbf16>
    %cst_8 = arith.constant dense<0.000000e+00> : vector<8x512xf32>
    %10 = tpu.matmul %8, %9, %cst_8 {dimension_numbers = #tpu.dot_dimension_numbers<[1], [0], [0], [1], [0, 0, 1, 1], [], []>} : vector<8x512xbf16>, vector<512x512xbf16>, vector<8x512xf32> -> vector<8x512xf32>
    %c0_9 = arith.constant 0 : index
    %c0_10 = arith.constant 0 : index
    %11 = vector.load %arg5[%c0_9, %c0_10] : memref<1x512xf32, #tpu.memory_space<vmem>>, vector<1x512xf32>
    %12 = vector.broadcast %11 : vector<1x512xf32> to vector<8x512xf32>
    %13 = arith.addf %10, %12 : vector<8x512xf32>
    %cst_11 = arith.constant 0.000000e+00 : f32
    %14 = vector.broadcast %cst_11 : f32 to vector<8x512xf32>
    %15 = arith.maximumf %13, %14 : vector<8x512xf32>
    %16 = arith.truncf %15 : vector<8x512xf32> to vector<8x512xbf16>
    %c0_12 = arith.constant 0 : index
    %c0_13 = arith.constant 0 : index
    %17 = vector.load %arg6[%c0_12, %c0_13] : memref<512x128xbf16, #tpu.memory_space<vmem>>, vector<512x128xbf16>
    %cst_14 = arith.constant dense<0.000000e+00> : vector<8x128xf32>
    %18 = tpu.matmul %16, %17, %cst_14 {dimension_numbers = #tpu.dot_dimension_numbers<[1], [0], [0], [1], [0, 0, 1, 1], [], []>} : vector<8x512xbf16>, vector<512x128xbf16>, vector<8x128xf32> -> vector<8x128xf32>
    %c0_15 = arith.constant 0 : index
    %c0_16 = arith.constant 0 : index
    %19 = vector.load %arg7[%c0_15, %c0_16] : memref<1x128xf32, #tpu.memory_space<vmem>>, vector<1x128xf32>
    %20 = vector.broadcast %19 : vector<1x128xf32> to vector<8x128xf32>
    %21 = arith.addf %18, %20 : vector<8x128xf32>
    %cst_17 = arith.constant 0.000000e+00 : f32
    %22 = vector.broadcast %cst_17 : f32 to vector<8x128xf32>
    %23 = arith.maximumf %21, %22 : vector<8x128xf32>
    %24 = arith.truncf %23 : vector<8x128xf32> to vector<8x128xbf16>
    %c0_18 = arith.constant 0 : index
    %c0_19 = arith.constant 0 : index
    %25 = vector.load %arg8[%c0_18, %c0_19] : memref<128x256xbf16, #tpu.memory_space<vmem>>, vector<128x256xbf16>
    %cst_20 = arith.constant dense<0.000000e+00> : vector<8x256xf32>
    %26 = tpu.matmul %24, %25, %cst_20 {dimension_numbers = #tpu.dot_dimension_numbers<[1], [0], [0], [1], [0, 0, 1, 1], [], []>} : vector<8x128xbf16>, vector<128x256xbf16>, vector<8x256xf32> -> vector<8x256xf32>
    %c0_21 = arith.constant 0 : index
    %c0_22 = arith.constant 0 : index
    %27 = vector.load %arg9[%c0_21, %c0_22] : memref<1x256xf32, #tpu.memory_space<vmem>>, vector<1x256xf32>
    %28 = vector.broadcast %27 : vector<1x256xf32> to vector<8x256xf32>
    %29 = arith.addf %26, %28 : vector<8x256xf32>
    %30 = vector.extract_strided_slice %29 {offsets = [0, 0], sizes = [8, 128], strides = [1, 1]} : vector<8x256xf32> to vector<8x128xf32>
    %cst_23 = arith.constant 0.000000e+00 : f32
    %31 = vector.broadcast %cst_23 : f32 to vector<8x128xf32>
    %32 = arith.maximumf %30, %31 : vector<8x128xf32>
    %33 = vector.extract_strided_slice %29 {offsets = [0, 128], sizes = [8, 128], strides = [1, 1]} : vector<8x256xf32> to vector<8x128xf32>
    %34 = arith.truncf %32 : vector<8x128xf32> to vector<8x128xbf16>
    %c0_24 = arith.constant 0 : index
    %c0_25 = arith.constant 0 : index
    %35 = vector.load %arg10[%c0_24, %c0_25] : memref<128x1xbf16, #tpu.memory_space<vmem>>, vector<128x1xbf16>
    %cst_26 = arith.constant dense<0.000000e+00> : vector<8x1xf32>
    %36 = tpu.matmul %34, %35, %cst_26 {dimension_numbers = #tpu.dot_dimension_numbers<[1], [0], [0], [1], [0, 0, 1, 1], [], []>} : vector<8x128xbf16>, vector<128x1xbf16>, vector<8x1xf32> -> vector<8x1xf32>
    %c0_27 = arith.constant 0 : index
    %c0_28 = arith.constant 0 : index
    %37 = vector.load %arg11[%c0_27, %c0_28] : memref<1x1xf32, #tpu.memory_space<vmem>>, vector<1x1xf32>
    %38 = vector.broadcast %37 : vector<1x1xf32> to vector<8x1xf32>
    %39 = arith.addf %36, %38 : vector<8x1xf32>
    %cst_29 = arith.constant 0.000000e+00 : f32
    %40 = vector.broadcast %cst_29 : f32 to vector<8x1xf32>
    %41 = arith.subf %40, %39 : vector<8x1xf32>
    %42 = math.exp %41 : vector<8x1xf32>
    %cst_30 = arith.constant 1.000000e+00 : f32
    %43 = vector.broadcast %cst_30 : f32 to vector<8x1xf32>
    %44 = arith.addf %43, %42 : vector<8x1xf32>
    %45 = tpu.reciprocal %44 {approx = true} : vector<8x1xf32> -> vector<8x1xf32>
    %46 = tpu.iota {dimensions = array<i32: 1>} : vector<8x128xi32>
    %c3_i32 = arith.constant 3 : i32
    %47 = vector.broadcast %c3_i32 : i32 to vector<8x128xi32>
    %48 = arith.cmpi eq, %46, %47 : vector<8x128xi32>
    %49 = vector.shape_cast %45 : vector<8x1xf32> to vector<8x1xf32>
    %50 = vector.broadcast %49 : vector<8x1xf32> to vector<8x128xf32>
    %51 = arith.select %48, %50, %33 : vector<8x128xi1>, vector<8x128xf32>
    %c0_31 = arith.constant 0 : index
    %c0_32 = arith.constant 0 : index
    %52 = vector.load %arg12[%c0_31, %c0_32] : memref<8x128xf32, #tpu.memory_space<vmem>>, vector<8x128xf32>
    tpu.vector_store %arg12[%c0_31, %c0_32], %51 {strides = array<i32>} : memref<8x128xf32, #tpu.memory_space<vmem>>, vector<8x128xf32>,
    return
  }
  func.func @transform_0(%arg0: i32) -> (i32, i32) {
    %c0_i32 = arith.constant 0 : i32
    %c0_i32_0 = arith.constant 0 : i32
    return %arg0, %c0_i32 : i32, i32
  }
  func.func @transform_1(%arg0: i32) -> (i32, i32) {
    %c0_i32 = arith.constant 0 : i32
    %c0_i32_0 = arith.constant 0 : i32
    %c0_i32_1 = arith.constant 0 : i32
    return %c0_i32, %c0_i32_0 : i32, i32
  }
  func.func @transform_2(%arg0: i32) -> (i32, i32) {
    %c0_i32 = arith.constant 0 : i32
    %c0_i32_0 = arith.constant 0 : i32
    %c0_i32_1 = arith.constant 0 : i32
    return %c0_i32, %c0_i32_0 : i32, i32
  }
  func.func @transform_3(%arg0: i32) -> (i32, i32) {
    %c0_i32 = arith.constant 0 : i32
    %c0_i32_0 = arith.constant 0 : i32
    %c0_i32_1 = arith.constant 0 : i32
    return %c0_i32, %c0_i32_0 : i32, i32
  }
  func.func @transform_4(%arg0: i32) -> (i32, i32) {
    %c0_i32 = arith.constant 0 : i32
    %c0_i32_0 = arith.constant 0 : i32
    %c0_i32_1 = arith.constant 0 : i32
    return %c0_i32, %c0_i32_0 : i32, i32
  }
  func.func @transform_5(%arg0: i32) -> (i32, i32) {
    %c0_i32 = arith.constant 0 : i32
    %c0_i32_0 = arith.constant 0 : i32
    %c0_i32_1 = arith.constant 0 : i32
    return %c0_i32, %c0_i32_0 : i32, i32
  }
  func.func @transform_6(%arg0: i32) -> (i32, i32) {
    %c0_i32 = arith.constant 0 : i32
    %c0_i32_0 = arith.constant 0 : i32
    %c0_i32_1 = arith.constant 0 : i32
    return %c0_i32, %c0_i32_0 : i32, i32
  }
  func.func @transform_7(%arg0: i32) -> (i32, i32) {
    %c0_i32 = arith.constant 0 : i32
    %c0_i32_0 = arith.constant 0 : i32
    %c0_i32_1 = arith.constant 0 : i32
    return %c0_i32, %c0_i32_0 : i32, i32
  }
  func.func @transform_8(%arg0: i32) -> (i32, i32) {
    %c0_i32 = arith.constant 0 : i32
    %c0_i32_0 = arith.constant 0 : i32
    %c0_i32_1 = arith.constant 0 : i32
    return %c0_i32, %c0_i32_0 : i32, i32
  }
  func.func @transform_9(%arg0: i32) -> (i32, i32) {
    %c0_i32 = arith.constant 0 : i32
    %c0_i32_0 = arith.constant 0 : i32
    %c0_i32_1 = arith.constant 0 : i32
    return %c0_i32, %c0_i32_0 : i32, i32
  }
  func.func @transform_10(%arg0: i32) -> (i32, i32) {
    %c0_i32 = arith.constant 0 : i32
    %c0_i32_0 = arith.constant 0 : i32
    %c0_i32_1 = arith.constant 0 : i32
    return %c0_i32, %c0_i32_0 : i32, i32
  }
  func.func @transform_11(%arg0: i32) -> (i32, i32) {
    %c0_i32 = arith.constant 0 : i32
    %c0_i32_0 = arith.constant 0 : i32
    return %arg0, %c0_i32 : i32, i32
  }
}

</mosaic_0001>

<bundles_post_ra>
// kernel: tpu_custom_call.1
= control target key start
LH: loop header
LB: loop body
LE: loop exit
PB: predicated region body
PF: predicated region fallthrough
CT: control target
= control target key end

     0   :  { %s4169_s0 = inlined_call_operand.vmem [shape: bf16[24,310], index: 0, kind: input, shape index: {}]   ;;  %s4170_s1 = inlined_call_operand.hbm [shape: bf16[310,512], index: 1, kind: input, shape index: {}]   ;;  %s4171_s2 = inlined_call_operand.vmem [shape: f32[1,512], index: 2, kind: input, shape index: {}]   ;;  %s4172_s3 = inlined_call_operand.hbm [shape: bf16[512,512], index: 3, kind: input, shape index: {}]   ;;  %s4173_s4 = inlined_call_operand.vmem [shape: f32[1,512], index: 4, kind: input, shape index: {}]   ;;  %s4174_s5 = inlined_call_operand.hbm [shape: bf16[512,128], index: 5, kind: input, shape index: {}]   ;;  %s4175_s6 = inlined_call_operand.vmem [shape: f32[1,128], index: 6, kind: input, shape index: {}]   ;;  %s4176_s7 = inlined_call_operand.hbm [shape: bf16[128,256], index: 7, kind: input, shape index: {}]   ;;  %s4177_s8 = inlined_call_operand.vmem [shape: f32[1,256], index: 8, kind: input, shape index: {}]   ;;  %s4178_s9 = inlined_call_operand.vmem [shape: bf16[128,1], index: 9, kind: input, shape index: {}]   ;;  %s4179_s10 = inlined_call_operand.<no memory space> [shape: f32[1,1], index: 10, kind: input, shape index: {}]   ;;  %s4180_s11 = inlined_call_operand.hbm [shape: f32[24,128], index: 11, kind: output, shape index: {}]  }
   0x1   :  { %v16_v0 = vstv %s4179_s10 }
   0x2   :  { %17 = vst [vmem:[#allocation2] sm:$0x1] %v16_v0 }
   0x3   :  { %18 = vsyncpa [#allocation4], 0 }
   0x4   :  { %19 = vsyncpa [#allocation7], 0 }
   0x5   :  { %20 = vsyncpa [#allocation10], 0 }
   0x6   :  { %21 = vsyncpa [#allocation5], 0 }
   0x7   :  { %23 = vsyncpa [#allocation5 + $0x1], 0  ;;  %s3927_s19 = smov 0   ;;  %s3929_s20 = smov 0  }
   0x8   :  { %s3931_s21 = smov 0   ;;  %s3933_s22 = smov 0  }
   0x9 LB: > { %s3948_s10 = sadd.s32 4294967295, %s3848_s22   ;;  %s2836_s23 = sadd.s32 4294967294, %s3848_s22   ;;  %s3848_s22 = sphi %s3933_s22, %s4200_s22   ;;  %s3844_s21 = sphi %s3931_s21, %s4199_s21   ;;  %s3840_s20 = sphi %s3929_s20, %s4198_s20   ;;  %s3836_s19 = sphi %s3927_s19, %s4197_s19  }
   0xa   : > { %s3952_s24 = sadd.s32 1, %s3848_s22   ;;  %s272_s25 = sadd.s32 1, %s3844_s21 }
   0xb   : > { %s269_s26 = ssub.s32 %s3848_s22, %s3952_s24  ;;  %p282_p0 = scmp.ne.s32.totalorder %s3844_s21, %s3840_s20 }
   0xc   : > { %p270_p1 = scmp.eq.s32.totalorder %s269_s26, 0  ;;  %p283_p2 = scmp.eq.s32.totalorder %s3948_s10, 2 }
   0xd   : > { %p288_p3 = scmp.ne.s32.totalorder %s3840_s20, %s3836_s19  ;;  %p289_p4 = scmp.eq.s32.totalorder %s2836_s23, 2 }
   0xe   : > { %s3963_s27 = scalar_select %p270_p1, %s3844_s21, %s272_s25  }
   0xf   : > { %p3965_p5 = por %p283_p2, %p282_p0  ;;  %p3969_p6 = por %p289_p4, %p288_p3 }
  0x10   : > { %4183 = sst [smem:[#allocation16_spill]] %s3963_s27  ;;  %p2837_p7 = scmp.ge.s32.totalorder %s3848_s22, 1 }
  0x11   : > { %s4184_s28 = scalar_select %p3965_p5, 1, 0 }
  0x12   : > { %s4185_s29 = scalar_select %p3969_p6, 1, 0 }
  0x13   : > { %p296_p8 = scmp.lt.s32.totalorder %s3848_s22, 4  ;;  %p4181_p9 = scmp.eq.s32.totalorder %s3948_s10, 0 }
  0x14   : > { %s3850_s12 = smov [#allocation6]   ;;  %s3851_s15 = smov [#allocation3]  }
  0x15   : > { %p3976_p10 = pnand %p2837_p7, %p296_p8  ;;  %s324_s13 = sshll.u32 %s3850_s12, 4  ;;  %s325_s13 = int_to_ptr.vmem [resolvable:$true] %s324_s13 }
  0x16   : > { %s308_s16 = sshll.u32 %s3851_s15, 4  ;;  %s3852_s17 = smov [#allocation8]   ;;  %s309_s16 = int_to_ptr.vmem [resolvable:$true] %s308_s16 }
  0x17   : > { %p3219_p11 = pneg %p3976_p10  ;;  %s340_s18 = sshll.u32 %s3852_s17, 4  ;;  %s341_s18 = int_to_ptr.vmem [resolvable:$true] %s340_s18 }
  0x18   : > { %s3683_s23 = scalar_lea.vmem %s325_s13, 16384  ;;  %p3691_p3 = scmp.lt.s32.totalorder %s325_s13, %s325_s13 }
  0x19   : > { %p3984_p12 = pnand %p4181_p9, %p3219_p11  ;;  %p3684_p0 = scmp.ne.s32.totalorder %s325_s13, %s3683_s23 }
  0x1a   : > { %p3692_p4 = scmp.lt.s32.totalorder %s3683_s23, %s3683_s23 }
  0x1b   : > { %p3674_p13 = pneg %p3984_p12 }
  0x1c   : > { %p3693_p7 = por %p3692_p4, %p3691_p3 }
  0x1d   : > { %p3686_p1 = pnand %p3684_p0, %p3674_p13 }
  0x1f   : > { %p3687_p2 = pneg %p3686_p1 }
  0x21   : > { %p3694_p8 = pnand %p3693_p7, %p3687_p2 }
  0x23   : > { %3697 = shalt.err (!%p3694_p8)
}
  0x24   : > { %s3853_s25 = smov 256   ;;  %s3854_s26 = smov 16  }
  0x25   : > { %3225 = dma.hbm_to_vmem [thread:$0]  (!%p3984_p12), %s4172_s3, 16384, %s325_s13, [#allocation7], %s3853_s25, %s3853_s25, %s3854_s26  }
  0x26   : > { %s3709_s17 = scalar_lea.vmem %s309_s16, 9984  ;;  %p3717_p9 = scmp.lt.s32.totalorder %s309_s16, %s309_s16 }
  0x27   : > { %p3710_p11 = scmp.ne.s32.totalorder %s309_s16, %s3709_s17  ;;  %p3718_p6 = scmp.lt.s32.totalorder %s3709_s17, %s3709_s17 }
  0x29   : > { %p3712_p0 = pnand %p3710_p11, %p3674_p13  ;;  %p3719_p3 = por %p3718_p6, %p3717_p9 }
  0x2b   : > { %p3713_p1 = pneg %p3712_p0 }
  0x2d   : > { %p3720_p2 = pnand %p3719_p3, %p3713_p1 }
  0x2f   : > { %3723 = shalt.err (!%p3720_p2)
}
  0x30   : > { %3222 = dma.hbm_to_vmem [thread:$0]  (!%p3984_p12), %s4170_s1, 9984, %s309_s16, [#allocation4], %s3853_s25, %s3853_s25, %s3854_s26  }
  0x31   : > { %s3735_s13 = scalar_lea.vmem %s341_s18, 4096  ;;  %p3743_p11 = scmp.lt.s32.totalorder %s341_s18, %s341_s18 }
  0x32   : > { %p3736_p4 = scmp.ne.s32.totalorder %s341_s18, %s3735_s13  ;;  %p3744_p0 = scmp.lt.s32.totalorder %s3735_s13, %s3735_s13 }
  0x34   : > { %p3738_p7 = pnand %p3736_p4, %p3674_p13  ;;  %p3745_p5 = por %p3744_p0, %p3743_p11 }
  0x36   : > { %p3739_p8 = pneg %p3738_p7 }
  0x38   : > { %p3746_p6 = pnand %p3745_p5, %p3739_p8 }
  0x3a   : > { %3749 = shalt.err (!%p3746_p6)
}
  0x3b   : > { %s3855_s12 = smov 64   ;;  %s3856_s15 = smov 4  }
  0x3c   : > { %3228 = dma.hbm_to_vmem [thread:$0]  (!%p3984_p12), %s4174_s5, 4096, %s341_s18, [#allocation7], %s3855_s12, %s3855_s12, %s3856_s15  }
  0x3d   : > { %s3857_s16 = smov [#allocation9]  }
  0x3e   : > { %s356_s25 = sshll.u32 %s3857_s16, 4  ;;  %s357_s25 = int_to_ptr.vmem [resolvable:$true] %s356_s25 }
  0x3f   : > { %s3761_s26 = scalar_lea.vmem %s357_s25, 2048  ;;  %p3769_p5 = scmp.lt.s32.totalorder %s357_s25, %s357_s25 }
  0x40   : > { %p3762_p9 = scmp.ne.s32.totalorder %s357_s25, %s3761_s26  ;;  %p3770_p2 = scmp.lt.s32.totalorder %s3761_s26, %s3761_s26 }
  0x42   : > { %p3764_p1 = pnand %p3762_p9, %p3674_p13  ;;  %p3771_p4 = por %p3770_p2, %p3769_p5 }
  0x44   : > { %p3765_p3 = pneg %p3764_p1 }
  0x46   : > { %p3772_p7 = pnand %p3771_p4, %p3765_p3 }
  0x48   : > { %3775 = shalt.err (!%p3772_p7)
}
  0x49   : > { %s3858_s23 = smov 128   ;;  %s3859_s13 = smov 8  }
  0x4a   : > { %3231 = dma.hbm_to_vmem [thread:$0]  (!%p3984_p12), %s4176_s7, 2048, %s357_s25, [#allocation10], %s3858_s23, %s3858_s23, %s3859_s13  }
  0x4b   : > { %389 = sbr.rel (%p3976_p10) target bundleno = 1411 (0x583), region = 64  ;;  %p4188_p8 = scmp.eq.s32.totalorder (!%p3976_p10), %s3948_s10, 0 }
  0x50   : > { %3819 = dma.done.wait (%p4188_p8), [#allocation4], 9984   ;;  %p4189_p13 = pmov %p4188_p8 }
  0x51   : > { %p4190_p11 = pmov %p4188_p8 }
  0x52   : > { %3821 = vsyncadd (%p4189_p13), [#allocation4], 4294957312 }
  0x53   : > { %3823 = dma.done.wait (%p4190_p11), [#allocation7], 20480   ;;  %p4191_p0 = pmov %p4188_p8 }
  0x55   : > { %3825 = vsyncadd (%p4191_p0), [#allocation7], 4294946816  ;;  %p4192_p6 = pmov %p4191_p0 }
  0x56   : > { %p4193_p12 = pmov %p4191_p0 }
  0x57   : > { %3827 = dma.done.wait (%p4192_p6), [#allocation10], 2048  }
  0x58   : > { %3829 = vsyncadd (%p4193_p12), [#allocation10], 4294965248  ;;  %v3860_v1 = vmov 0   ;;  %p441_p10 = scmp.lt.s32.totalorder %s3948_s10, 2  ;;  %v3291_v2 = vld [vmem:[#allocation3 + $0xe4] ss:$16 sps:$4 sm:$0xff]  }
  0x59   : > { %1039 = vmatprep.mubr.bf16.mxu1 %v3860_v1  ;;  %3290 = vset.pattern.permute.xlu0 %v3860_v1  ;;  %vm953_vm0 = vcmask 1042432   ;;  %v525_v3 = vld [vmem:[#allocation3 + $0x260] sm:$0x77]  ;;  %v3319_v21 = vld [vmem:[#allocation3 + $0xec] ss:$16 sps:$4 sm:$0xff]   ;;  %vm949_vm1 = vcmask 441344  }
  0x5a   : > { %v3294_v4 = vld [vmem:[#allocation3 + $0xe0] ss:$16 sps:$4 sm:$0xff]   ;;  %s442_s30 = scalar_select %p441_p10, %s3948_s10, 2  ;;  %966 = vmatprep.subr.bf16.mxu0 %v3291_v2  ;;  %v2930_v5 = vcombine.high %v525_v3, %v525_v3  ;;  %v2929_v6 = vcombine.low %v525_v3, %v525_v3  ;;  %v3296_v7 = vld [vmem:[#allocation3 + $0xc4] ss:$16 sps:$4 sm:$0xff]   ;;  %vm3862_vm2 = vmmov 0  }
  0x5b   : > { %967 = vmatpush1.bf16.msra.mxu0 %v3294_v4  ;;  %v3298_v8 = vld [vmem:[#allocation3 + $0x244] ss:$16 sps:$4 sm:$0xff]   ;;  %v3300_v9 = vld [vmem:[#allocation3 + $0xc0] ss:$16 sps:$4 sm:$0xff]   ;;  %v3317_v25 = vld [vmem:[#allocation3 + $0xe8] ss:$16 sps:$4 sm:$0xff]  }
  0x5c   : > { %2933 = vmatprep.subr.msk.bf16.mxu1 %vm953_vm0, %v2930_v5  ;;  %v955_v10 = vsel %vm953_vm0, %v2929_v6, 0  ;;  %968 = vmatprep.subr.bf16.mxu0 %v3296_v7  ;;  %v3301_v11 = vld [vmem:[#allocation3 + $0x240] ss:$16 sps:$4 sm:$0xff]   ;;  %v3302_v12 = vld [vmem:[#allocation3 + $0xa4] ss:$16 sps:$4 sm:$0xff]   ;;  %s3200_s14 = smul.u32 12, %s442_s30 }
  0x5d   : > { %1016 = vmatpush1.bf16.msra.mxu1 %v955_v10  ;;  %v3304_v13 = vld [vmem:[#allocation3 + $0x224] ss:$16 sps:$4 sm:$0xff]   ;;  %v3306_v14 = vld [vmem:[#allocation3 + $0xa0] ss:$16 sps:$4 sm:$0xff]   ;;  %v3325_v26 = vld [vmem:[#allocation3 + $0xcc] ss:$16 sps:$4 sm:$0xff]  }
  0x5e   : > { %1017 = vmatprep.subr.bf16.mxu1 %v3298_v8  ;;  %v3308_v15 = vld [vmem:[#allocation3 + $0x84] ss:$16 sps:$4 sm:$0xff]   ;;  %v3307_v16 = vld [vmem:[#allocation3 + $0x220] ss:$16 sps:$4 sm:$0xff]   ;;  %s4045_s17 = scalar_lea.vmem %s4169_s0, %s3200_s14  ;;  %v3323_v29 = vld [vmem:[#allocation3 + $0xc8] ss:$16 sps:$4 sm:$0xff]  }
  0x5f   : > { %969 = vmatpush1.bf16.msra.mxu0 %v3300_v9  ;;  %v3310_v17 = vld [vmem:[#allocation3 + $0x204] ss:$16 sps:$4 sm:$0xff]   ;;  %v3312_v18 = vld [vmem:[#allocation3 + $0x80] ss:$16 sps:$4 sm:$0xff]   ;;  %v3331_v30 = vld [vmem:[#allocation3 + $0xac] ss:$16 sps:$4 sm:$0xff]  }
  0x60   : > { %970 = vmatprep.subr.bf16.mxu0 %v3302_v12  ;;  %v3314_v19 = vld [vmem:[#allocation3 + $0x64] ss:$16 sps:$4 sm:$0xff]   ;;  %v3313_v20 = vld [vmem:[#allocation3 + $0x200] ss:$16 sps:$4 sm:$0xff]   ;;  %v3329_v33 = vld [vmem:[#allocation3 + $0xa8] ss:$16 sps:$4 sm:$0xff]  }
  0x61   : > { %1018 = vmatpush1.bf16.msra.mxu1 %v3301_v11  ;;  %v4048_v22 = vld [vmem:[%s4045_s17 + $0x8] ss:$0 sps:$4 sm:$0xff]   ;;  %v3320_v23 = vld [vmem:[#allocation3 + $0x60] ss:$16 sps:$4 sm:$0xff]   ;;  %v3337_v34 = vld [vmem:[#allocation3 + $0x8c] ss:$16 sps:$4 sm:$0xff]  }
  0x62   : > { %1019 = vmatprep.subr.bf16.mxu1 %v3304_v13  ;;  %v3321_v24 = vld [vmem:[#allocation3 + $0x44] ss:$16 sps:$4 sm:$0xff]   ;;  %v3326_v27 = vld [vmem:[#allocation3 + $0x40] ss:$16 sps:$4 sm:$0xff]   ;;  %v3335_v37 = vld [vmem:[#allocation3 + $0x88] ss:$16 sps:$4 sm:$0xff]  }
  0x63   : > { %971 = vmatpush1.bf16.msra.mxu0 %v3306_v14  ;;  %v3327_v28 = vld [vmem:[#allocation3 + $0x24] ss:$16 sps:$4 sm:$0xff]   ;;  %v3332_v31 = vld [vmem:[#allocation3 + $0x20] ss:$16 sps:$4 sm:$0xff]   ;;  %v3343_v38 = vld [vmem:[#allocation3 + $0x6c] ss:$16 sps:$4 sm:$0xff]  }
  0x64   : > { %972 = vmatprep.subr.bf16.mxu0 %v3308_v15  ;;  %v3333_v32 = vld [vmem:[#allocation3 + $0x4] ss:$16 sps:$4 sm:$0xff]   ;;  %v3338_v35 = vld [vmem:[#allocation3] ss:$16 sps:$4 sm:$0xff]   ;;  %v3341_v41 = vld [vmem:[#allocation3 + $0x68] ss:$16 sps:$4 sm:$0xff]  }
  0x65   : > { %1020 = vmatpush1.bf16.msra.mxu1 %v3307_v16  ;;  %v3339_v36 = vld [vmem:[#allocation3 + $0x1e4] ss:$16 sps:$4 sm:$0xff]   ;;  %v3344_v39 = vld [vmem:[#allocation3 + $0x1e0] ss:$16 sps:$4 sm:$0xff]   ;;  %v3349_v42 = vld [vmem:[#allocation3 + $0x4c] ss:$16 sps:$4 sm:$0xff]  }
  0x66   : > { %1021 = vmatprep.subr.bf16.mxu1 %v3310_v17  ;;  %v3345_v40 = vld [vmem:[#allocation3 + $0x1c4] ss:$16 sps:$4 sm:$0xff]   ;;  %v3350_v43 = vld [vmem:[#allocation3 + $0x1c0] ss:$16 sps:$4 sm:$0xff]   ;;  %v3347_v45 = vld [vmem:[#allocation3 + $0x48] ss:$16 sps:$4 sm:$0xff]  }
  0x67   : > { %973 = vmatpush1.bf16.msra.mxu0 %v3312_v18  ;;  %v3351_v44 = vld [vmem:[#allocation3 + $0x1a4] ss:$16 sps:$4 sm:$0xff]   ;;  %v3355_v46 = vld [vmem:[#allocation3 + $0x2c] ss:$16 sps:$4 sm:$0xff]   ;;  %v3356_v47 = vld [vmem:[#allocation3 + $0x1a0] ss:$16 sps:$4 sm:$0xff]  }
  0x68   : > { %974 = vmatprep.subr.bf16.mxu0 %v3314_v19  ;;  %v3357_v48 = vld [vmem:[#allocation3 + $0x184] ss:$16 sps:$4 sm:$0xff]   ;;  %v3353_v49 = vld [vmem:[#allocation3 + $0x28] ss:$16 sps:$4 sm:$0xff]   ;;  %v3361_v50 = vld [vmem:[#allocation3 + $0xc] ss:$16 sps:$4 sm:$0xff]  }
  0x69   : > { %1022 = vmatpush1.bf16.msra.mxu1 %v3313_v20  ;;  %v447_v51 = vld [vmem:[%s4045_s17] sm:$0xff]  ;;  %v3359_v55 = vld [vmem:[#allocation3 + $0x8] ss:$16 sps:$4 sm:$0xff]   ;;  %s438_s16 = sand.u32 1, %s3840_s20   ;;  %s3124_s26 = sshll.u32 %s3948_s10, 7 }
  0x6a   : > { %1048 = vmatprep.subr.bf16.mxu1 %v3319_v21  ;;  %v3362_v52 = vld [vmem:[#allocation3 + $0x180] ss:$16 sps:$4 sm:$0xff]   ;;  %v2851_v53 = vcombine.high %v447_v51, %v447_v51  ;;  %v3363_v54 = vld [vmem:[#allocation3 + $0x164] ss:$16 sps:$4 sm:$0xff]   ;;  %v3367_v56 = vld [vmem:[#allocation3 + $0x1ec] ss:$16 sps:$4 sm:$0xff]   ;;  %v2850_v12 = vcombine.low %v447_v51, %v447_v51  ;;  %s4134_s30 = scalar_lea.hbm %s4180_s11, %s3124_s26 }
  0x6b   : > { %975 = vmatpush1.bf16.msra.mxu0 %v3320_v23  ;;  %v3368_v57 = vld [vmem:[#allocation3 + $0x160] ss:$16 sps:$4 sm:$0xff]   ;;  %v3369_v58 = vld [vmem:[#allocation3 + $0x144] ss:$16 sps:$4 sm:$0xff]   ;;  %v3365_v59 = vld [vmem:[#allocation3 + $0x1e8] ss:$16 sps:$4 sm:$0xff]  }
  0x6c   : > { %2934 = vmatmul.mubr.msk.bf16.vlgmr.msra.gmra.mxu1 %vm949_vm1, %v4048_v22  ;;  %976 = vmatprep.subr.bf16.mxu0 %v3321_v24  ;;  %v3373_v60 = vld [vmem:[#allocation3 + $0x1cc] ss:$16 sps:$4 sm:$0xff]   ;;  %v3374_v61 = vld [vmem:[#allocation3 + $0x140] ss:$16 sps:$4 sm:$0xff]   ;;  %v3375_v62 = vld [vmem:[#allocation3 + $0x124] ss:$16 sps:$4 sm:$0xff]  }
  0x6d   : > { %1049 = vmatpush1.bf16.msra.mxu1 %v3317_v25  ;;  %998 = vmatprep.mubr.bf16.mxu0 %v2851_v53  ;;  %v3371_v63 = vld [vmem:[#allocation3 + $0x1c8] ss:$16 sps:$4 sm:$0xff]   ;;  %v3379_v0 = vld [vmem:[#allocation3 + $0x1ac] ss:$16 sps:$4 sm:$0xff]   ;;  %v3380_v2 = vld [vmem:[#allocation3 + $0x120] ss:$16 sps:$4 sm:$0xff]  }
  0x6e   : > { %1050 = vmatprep.subr.bf16.mxu1 %v3325_v26  ;;  %1080 = vmatprep.mubr.bf16.mxu1 %v2851_v53  ;;  %v3381_v3 = vld [vmem:[#allocation3 + $0x104] ss:$16 sps:$4 sm:$0xff]   ;;  %v3377_v4 = vld [vmem:[#allocation3 + $0x1a8] ss:$16 sps:$4 sm:$0xff]   ;;  %v3385_v6 = vld [vmem:[#allocation3 + $0x18c] ss:$16 sps:$4 sm:$0xff]  }
  0x6f   : > { %977 = vmatpush1.bf16.msra.mxu0 %v3326_v27  ;;  %v526_v5 = vld [vmem:[#allocation3 + $0x268] sm:$0x77]  ;;  %v3386_v7 = vld [vmem:[#allocation3 + $0x100] ss:$16 sps:$4 sm:$0xff]   ;;  %v3414_v27 = vld [vmem:[#allocation6 + $0xe4] ss:$16 sps:$4 sm:$0xff]  }
  0x70   : > { %978 = vmatprep.subr.bf16.mxu0 %v3327_v28  ;;  %v3383_v8 = vld [vmem:[#allocation3 + $0x188] ss:$16 sps:$4 sm:$0xff]   ;;  %v3391_v9 = vld [vmem:[#allocation3 + $0x16c] ss:$16 sps:$4 sm:$0xff]   ;;  %v2932_v10 = vcombine.high %v526_v5, %v526_v5  ;;  %v2931_v11 = vcombine.low %v526_v5, %v526_v5  ;;  %v3451_v51 = vld [vmem:[#allocation6 + $0x260] ss:$16 sps:$4 sm:$0xff]  }
  0x71   : > { %1051 = vmatpush1.bf16.msra.mxu1 %v3323_v29  ;;  %v3399_v13 = vld [vmem:[#allocation3 + $0x24c] ss:$16 sps:$4 sm:$0xff]   ;;  %v3389_v14 = vld [vmem:[#allocation3 + $0x168] ss:$16 sps:$4 sm:$0xff]   ;;  %v3412_v29 = vld [vmem:[#allocation6 + $0xe0] ss:$16 sps:$4 sm:$0xff]  }
  0x72   : > { %1052 = vmatprep.subr.bf16.mxu1 %v3331_v30  ;;  %v961_v15 = vsel %vm953_vm0, %v2931_v11, 0  ;;  %v3396_v16 = vld [vmem:[#allocation3 + $0x14c] ss:$16 sps:$4 sm:$0xff]   ;;  %v3397_v17 = vld [vmem:[#allocation3 + $0x248] ss:$16 sps:$4 sm:$0xff]   ;;  %s2848_s25 = sshll.u32 %s438_s16, 3 }
  0x73   : > { %979 = vmatpush1.bf16.msra.mxu0 %v3332_v31  ;;  %v3405_v18 = vld [vmem:[#allocation3 + $0x22c] ss:$16 sps:$4 sm:$0xff]   ;;  %v3394_v19 = vld [vmem:[#allocation3 + $0x148] ss:$16 sps:$4 sm:$0xff]   ;;  %v3417_v30 = vld [vmem:[#allocation6 + $0xc4] ss:$16 sps:$4 sm:$0xff]  }
  0x74   : > { %980 = vmatprep.subr.bf16.mxu0 %v3333_v32  ;;  %v3402_v20 = vld [vmem:[#allocation3 + $0x12c] ss:$16 sps:$4 sm:$0xff]   ;;  %v3403_v21 = vld [vmem:[#allocation3 + $0x228] ss:$16 sps:$4 sm:$0xff]   ;;  %v3415_v31 = vld [vmem:[#allocation6 + $0xc0] ss:$16 sps:$4 sm:$0xff]  }
  0x75   : > { %1053 = vmatpush1.bf16.msra.mxu1 %v3329_v33  ;;  %v3411_v23 = vld [vmem:[#allocation3 + $0x20c] ss:$16 sps:$4 sm:$0xff]   ;;  %v3400_v24 = vld [vmem:[#allocation3 + $0x128] ss:$16 sps:$4 sm:$0xff]   ;;  %v3420_v32 = vld [vmem:[#allocation6 + $0xa4] ss:$16 sps:$4 sm:$0xff]  }
  0x76   : > { %1054 = vmatprep.subr.bf16.mxu1 %v3337_v34  ;;  %v3408_v25 = vld [vmem:[#allocation3 + $0x10c] ss:$16 sps:$4 sm:$0xff]   ;;  %v3409_v26 = vld [vmem:[#allocation3 + $0x208] ss:$16 sps:$4 sm:$0xff]   ;;  %v3418_v33 = vld [vmem:[#allocation6 + $0xa0] ss:$16 sps:$4 sm:$0xff]  }
  0x77   : > { %981 = vmatpush1.bf16.msra.mxu0 %v3338_v35  ;;  %v3406_v28 = vld [vmem:[#allocation3 + $0x108] ss:$16 sps:$4 sm:$0xff]   ;;  %v3423_v34 = vld [vmem:[#allocation6 + $0x84] ss:$16 sps:$4 sm:$0xff]   ;;  %v3427_v35 = vld [vmem:[#allocation6 + $0x2e0] ss:$16 sps:$4 sm:$0xff]  }
  0x78   : > { %982 = vmatprep.subr.bf16.mxu0 %v3339_v36  ;;  %v3421_v36 = vld [vmem:[#allocation6 + $0x80] ss:$16 sps:$4 sm:$0xff]   ;;  %v3459_v53 = vld [vmem:[#allocation6 + $0x244] ss:$16 sps:$4 sm:$0xff]   ;;  %s440_s23 = scalar_lea.vmem [#allocation11], %s2848_s25  ;;  %s2723_s14 = scalar_lea.sflag [#allocation5], %s438_s16 }
  0x79   : > { %1055 = vmatpush1.bf16.msra.mxu1 %v3335_v37  ;;  %v3429_v37 = vld [vmem:[#allocation6 + $0x2e4] ss:$16 sps:$4 sm:$0xff]   ;;  %v3466_v5 = vld [vmem:[#allocation6 + $0x180] ss:$16 sps:$4 sm:$0xff]   ;;  %s2736_s13 = sshll.u32 %s440_s23, 4  ;;  %p4194_p1 = scmp.ne.s32.totalorder %s4184_s28, 0  ;;  %s2737_s13 = int_to_ptr.vmem [resolvable:$true] %s2736_s13 }
  0x7a   : > { %1056 = vmatprep.subr.bf16.mxu1 %v3343_v38  ;;  %v3426_v38 = vld [vmem:[#allocation6 + $0x64] ss:$16 sps:$4 sm:$0xff]   ;;  %v3478_v11 = vld [vmem:[#allocation6 + $0x140] ss:$16 sps:$4 sm:$0xff]   ;;  %s3776_s12 = scalar_lea.vmem %s2737_s13, 128  ;;  %s3863_s10 = smov [#allocation11]  }
  0x7b   : > { %983 = vmatpush2.bf16.msra.mxu0 %v3344_v39  ;;  %v3435_v39 = vld [vmem:[#allocation6 + $0x2c4] ss:$16 sps:$4 sm:$0xff]   ;;  %p3777_p9 = scmp.ne.s32.totalorder %s2737_s13, %s3776_s12  ;;  %s3780_s15 = sshll.u32 %s3863_s10, 4  ;;  %s3781_s15 = int_to_ptr.vmem [resolvable:$false] %s3780_s15 }
  0x7c   : > { %984 = vmatprep.subr.bf16.mxu0 %v3345_v40  ;;  %v3433_v40 = vld [vmem:[#allocation6 + $0x2c0] ss:$16 sps:$4 sm:$0xff]   ;;  %s3782_s17 = scalar_lea.vmem %s3781_s15, 256  ;;  %p3783_p2 = scmp.lt.s32.totalorder %s2737_s13, %s3781_s15 }
  0x7d   : > { %1057 = vmatpush1.bf16.msra.mxu1 %v3341_v41  ;;  %v3441_v41 = vld [vmem:[#allocation6 + $0x2a4] ss:$16 sps:$4 sm:$0xff]   ;;  %p3778_p3 = pnand %p3777_p9, %p4194_p1  ;;  %p3784_p4 = scmp.lt.s32.totalorder %s3782_s17, %s3776_s12 }
  0x7e   : > { %1058 = vmatprep.subr.bf16.mxu1 %v3349_v42  ;;  %v3432_v42 = vld [vmem:[#allocation6 + $0x44] ss:$16 sps:$4 sm:$0xff]  }
  0x7f   : > { %985 = vmatpush2.bf16.msra.mxu0 %v3350_v43  ;;  %v3439_v43 = vld [vmem:[#allocation6 + $0x2a0] ss:$16 sps:$4 sm:$0xff]   ;;  %p3779_p5 = pneg %p3778_p3  ;;  %p3785_p7 = por %p3784_p4, %p3783_p2 }
  0x80   : > { %986 = vmatprep.subr.bf16.mxu0 %v3351_v44  ;;  %v3430_v44 = vld [vmem:[#allocation6 + $0x40] ss:$16 sps:$4 sm:$0xff]  }
  0x81   : > { %1059 = vmatpush1.bf16.msra.mxu1 %v3347_v45  ;;  %v3447_v45 = vld [vmem:[#allocation6 + $0x284] ss:$16 sps:$4 sm:$0xff]   ;;  %p3786_p8 = pnand %p3785_p7, %p3779_p5 }
  0x82   : > { %1060 = vmatprep.subr.bf16.mxu1 %v3355_v46  ;;  %v3438_v46 = vld [vmem:[#allocation6 + $0x24] ss:$16 sps:$4 sm:$0xff]  }
  0x83   : > { %987 = vmatpush2.bf16.msra.mxu0 %v3356_v47  ;;  %v3436_v47 = vld [vmem:[#allocation6 + $0x20] ss:$16 sps:$4 sm:$0xff]  }
  0x84   : > { %988 = vmatprep.subr.bf16.mxu0 %v3357_v48  ;;  %v3445_v48 = vld [vmem:[#allocation6 + $0x280] ss:$16 sps:$4 sm:$0xff]  }
  0x85   : > { %1061 = vmatpush1.bf16.msra.mxu1 %v3353_v49  ;;  %v3444_v49 = vld [vmem:[#allocation6 + $0x4] ss:$16 sps:$4 sm:$0xff]  }
  0x86   : > { %1062 = vmatprep.subr.bf16.mxu1 %v3361_v50  ;;  %v3453_v50 = vld [vmem:[#allocation6 + $0x264] ss:$16 sps:$4 sm:$0xff]  }
  0x87   : > { %989 = vmatpush2.bf16.msra.mxu0 %v3362_v52  ;;  %v3442_v52 = vld [vmem:[#allocation6] ss:$16 sps:$4 sm:$0xff]  }
  0x88   : > { %990 = vmatprep.subr.bf16.mxu0 %v3363_v54  ;;  %v3450_v54 = vld [vmem:[#allocation6 + $0x1e4] ss:$16 sps:$4 sm:$0xff]  }
  0x89   : > { %1063 = vmatpush1.bf16.msra.mxu1 %v3359_v55  ;;  %v3457_v55 = vld [vmem:[#allocation6 + $0x240] ss:$16 sps:$4 sm:$0xff]  }
  0x8a   : > { %1064 = vmatprep.subr.bf16.mxu1 %v3367_v56  ;;  %v3448_v56 = vld [vmem:[#allocation6 + $0x1e0] ss:$16 sps:$4 sm:$0xff]  }
  0x8b   : > { %991 = vmatpush2.bf16.msra.mxu0 %v3368_v57  ;;  %v3465_v57 = vld [vmem:[#allocation6 + $0x224] ss:$16 sps:$4 sm:$0xff]  }
  0x8c   : > { %992 = vmatprep.subr.bf16.mxu0 %v3369_v58  ;;  %v3456_v58 = vld [vmem:[#allocation6 + $0x1c4] ss:$16 sps:$4 sm:$0xff]  }
  0x8d   : > { %1065 = vmatpush2.bf16.msra.mxu1 %v3365_v59  ;;  %v3463_v59 = vld [vmem:[#allocation6 + $0x220] ss:$16 sps:$4 sm:$0xff]  }
  0x8e   : > { %1066 = vmatprep.subr.bf16.mxu1 %v3373_v60  ;;  %v3454_v60 = vld [vmem:[#allocation6 + $0x1c0] ss:$16 sps:$4 sm:$0xff]  }
  0x8f   : > { %993 = vmatpush2.bf16.msra.mxu0 %v3374_v61  ;;  %v3471_v61 = vld [vmem:[#allocation6 + $0x204] ss:$16 sps:$4 sm:$0xff]  }
  0x90   : > { %994 = vmatprep.subr.bf16.mxu0 %v3375_v62  ;;  %v3462_v62 = vld [vmem:[#allocation6 + $0x1a4] ss:$16 sps:$4 sm:$0xff]  }
  0x91   : > { %1067 = vmatpush2.bf16.msra.mxu1 %v3371_v63  ;;  %v3469_v63 = vld [vmem:[#allocation6 + $0x200] ss:$16 sps:$4 sm:$0xff]  }
  0x92   : > { %1068 = vmatprep.subr.bf16.mxu1 %v3379_v0  ;;  %v3460_v0 = vld [vmem:[#allocation6 + $0x1a0] ss:$16 sps:$4 sm:$0xff]  }
  0x93   : > { %995 = vmatpush2.bf16.msra.mxu0 %v3380_v2  ;;  %v3477_v2 = vld [vmem:[#allocation6 + $0x3e4] ss:$16 sps:$4 sm:$0xff]  }
  0x94   : > { %996 = vmatprep.subr.bf16.mxu0 %v3381_v3  ;;  %v3468_v3 = vld [vmem:[#allocation6 + $0x184] ss:$16 sps:$4 sm:$0xff]  }
  0x95   : > { %1069 = vmatpush2.bf16.msra.mxu1 %v3377_v4  ;;  %v3475_v4 = vld [vmem:[#allocation6 + $0x3e0] ss:$16 sps:$4 sm:$0xff]  }
  0x96   : > { %1070 = vmatprep.subr.bf16.mxu1 %v3385_v6  ;;  %v3483_v6 = vld [vmem:[#allocation6 + $0x3c4] ss:$16 sps:$4 sm:$0xff]  }
  0x97   : > { %997 = vmatpush2.bf16.msra.mxu0 %v3386_v7  ;;  %v3474_v7 = vld [vmem:[#allocation6 + $0x164] ss:$16 sps:$4 sm:$0xff]  }
  0x98   : > { %2935 = vmatprep.subr.msk.bf16.mxu0 %vm953_vm0, %v2932_v10  ;;  %v3480_v10 = vld [vmem:[#allocation6 + $0x144] ss:$16 sps:$4 sm:$0xff]  }
  0x99   : > { %1071 = vmatpush2.bf16.msra.mxu1 %v3383_v8  ;;  %v3481_v8 = vld [vmem:[#allocation6 + $0x3c0] ss:$16 sps:$4 sm:$0xff]  }
  0x9a   : > { %999 = vmatmul.mubr.bf16.vlgmr.msra.gmra.mxu0 %v2850_v12  ;;  %1072 = vmatprep.subr.bf16.mxu1 %v3391_v9  ;;  %v3472_v9 = vld [vmem:[#allocation6 + $0x160] ss:$16 sps:$4 sm:$0xff]  }
  0x9b   : > { %1098 = vmatpush1.bf16.msra.mxu0 %v961_v15  ;;  %1121 = vmatprep.mubr.bf16.mxu0 %v3860_v1  ;;  %v3487_v15 = vld [vmem:[#allocation6 + $0x3a0] ss:$16 sps:$4 sm:$0xff]  }
  0x9c   : > { %1099 = vmatprep.subr.bf16.mxu0 %v3399_v13  ;;  %v3484_v13 = vld [vmem:[#allocation6 + $0x120] ss:$16 sps:$4 sm:$0xff]  }
  0x9d   : > { %1073 = vmatpush2.bf16.msra.mxu1 %v3389_v14  ;;  %v3489_v14 = vld [vmem:[#allocation6 + $0x3a4] ss:$16 sps:$4 sm:$0xff]  }
  0x9e   : > { %1074 = vmatprep.subr.bf16.mxu1 %v3396_v16  ;;  %v3492_v16 = vld [vmem:[#allocation6 + $0x104] ss:$16 sps:$4 sm:$0xff]  }
  0x9f   : > { %1100 = vmatpush1.bf16.msra.mxu0 %v3397_v17  ;;  %v3490_v17 = vld [vmem:[#allocation6 + $0x100] ss:$16 sps:$4 sm:$0xff]  }
  0xa0   : > { %1101 = vmatprep.subr.bf16.mxu0 %v3405_v18  ;;  %v3495_v18 = vld [vmem:[#allocation6 + $0x384] ss:$16 sps:$4 sm:$0xff]  }
  0xa1   : > { %1075 = vmatpush2.bf16.msra.mxu1 %v3394_v19  ;;  %v3493_v19 = vld [vmem:[#allocation6 + $0x380] ss:$16 sps:$4 sm:$0xff]  }
  0xa2   : > { %1076 = vmatprep.subr.bf16.mxu1 %v3402_v20  ;;  %v3501_v20 = vld [vmem:[#allocation6 + $0xec] ss:$16 sps:$4 sm:$0xff]  }
  0xa3   : > { %1102 = vmatpush1.bf16.msra.mxu0 %v3403_v21  ;;  %v3496_v21 = vld [vmem:[#allocation6 + $0x360] ss:$16 sps:$4 sm:$0xff]  }
  0xa4   : > { %1103 = vmatprep.subr.bf16.mxu0 %v3411_v23  ;;  %v3498_v23 = vld [vmem:[#allocation6 + $0x364] ss:$16 sps:$4 sm:$0xff]  }
  0xa5   : > { %1077 = vmatpush2.bf16.msra.mxu1 %v3400_v24  ;;  %v3504_v24 = vld [vmem:[#allocation6 + $0x344] ss:$16 sps:$4 sm:$0xff]  }
  0xa6   : > { %1078 = vmatprep.subr.bf16.mxu1 %v3408_v25  ;;  %v3502_v25 = vld [vmem:[#allocation6 + $0x340] ss:$16 sps:$4 sm:$0xff]  }
  0xa7   : > { %1104 = vmatpush1.bf16.msra.mxu0 %v3409_v26  ;;  %v3510_v26 = vld [vmem:[#allocation6 + $0x324] ss:$16 sps:$4 sm:$0xff]  }
  0xa8   : > { %1928 = vmatprep.subr.bf16.mxu0 %v3414_v27  ;;  %v3508_v27 = vld [vmem:[#allocation6 + $0x320] ss:$16 sps:$4 sm:$0xff]  }
  0xa9   : > { %1079 = vmatpush2.bf16.msra.mxu1 %v3406_v28  ;;  %v3516_v28 = vld [vmem:[#allocation6 + $0x304] ss:$16 sps:$4 sm:$0xff]  }
  0xaa   : > { %2936 = vmatmul.mubr.msk.bf16.vlgmr.msra.gmra.mxu0 %vm949_vm1, %v4048_v22  ;;  %1969 = vmatprep.subr.bf16.mxu1 %v3429_v37  ;;  %v3424_v22 = vld [vmem:[#allocation6 + $0x60] ss:$16 sps:$4 sm:$0xff]  }
  0xab   : > { %1929 = vmatpush1.bf16.msra.mxu0 %v3412_v29  ;;  %v3514_v29 = vld [vmem:[#allocation6 + $0x300] ss:$16 sps:$4 sm:$0xff]  }
  0xac   : > { %1081 = vmatmul.mubr.bf16.vlgmr.msra.gmra.mxu1 %v2850_v12  ;;  %1930 = vmatprep.subr.bf16.mxu0 %v3417_v30  ;;  %v3486_v12 = vld [vmem:[#allocation6 + $0x124] ss:$16 sps:$4 sm:$0xff]   ;;  %v3525_v30 = vld [vmem:[#allocation6 + $0x2ec] ss:$16 sps:$4 sm:$0xff]  }
  0xad   : > { %1970 = vmatpush1.bf16.msra.mxu1 %v3427_v35  ;;  %v529_v35 = vlaneseq }
  0xae   : > { %1971 = vmatprep.subr.bf16.mxu1 %v3435_v39 }
  0xaf   : > { %1931 = vmatpush1.bf16.msra.mxu0 %v3415_v31 }
  0xb0   : > { %1932 = vmatprep.subr.bf16.mxu0 %v3420_v32 }
  0xb1   : > { %1972 = vmatpush1.bf16.msra.mxu1 %v3433_v40 }
  0xb2   : > { %1973 = vmatprep.subr.bf16.mxu1 %v3441_v41 }
  0xb3   : > { %1933 = vmatpush1.bf16.msra.mxu0 %v3418_v33 }
  0xb4   : > { %1934 = vmatprep.subr.bf16.mxu0 %v3423_v34 }
  0xb5   : > { %1974 = vmatpush1.bf16.msra.mxu1 %v3439_v43 }
  0xb6   : > { %1975 = vmatprep.subr.bf16.mxu1 %v3447_v45 }
  0xb7   : > { %1935 = vmatpush1.bf16.msra.mxu0 %v3421_v36  ;;  %v4059_v36 = vshrl.u32 %v529_v35, 7 }
  0xb8   : > { %1936 = vmatprep.subr.bf16.mxu0 %v3426_v38  ;;  %v527_v38 = vld [vmem:[%s4171_s2] sm:$0xf] }
  0xb9   : > { %1976 = vmatpush1.bf16.msra.mxu1 %v3445_v48  ;;  %v4062_v37 = vsub.s32 0, %v4059_v36  ;;  %v4068_v39 = vsub.s32 1, %v4059_v36 }
  0xba   : > { %1977 = vmatprep.subr.bf16.mxu1 %v3453_v50 }
  0xbb   : > { %1937 = vmatpush1.bf16.msra.mxu0 %v3424_v22  ;;  %v532_v40 = vrot.slane %v527_v38, %v4062_v37  ;;  %v536_v22 = vrot.slane %v527_v38, %v4068_v39 }
  0xbc   : > { %1938 = vmatprep.subr.bf16.mxu0 %v3432_v42 }
  0xbd   : > { %1978 = vmatpush1.bf16.msra.mxu1 %v3451_v51 }
  0xbe   : > { %1979 = vmatprep.subr.bf16.mxu1 %v3459_v53 }
  0xbf   : > { %1939 = vmatpush1.bf16.msra.mxu0 %v3430_v44 }
  0xc0   : > { %1940 = vmatprep.subr.bf16.mxu0 %v3438_v46 }
  0xc1   : > { %1980 = vmatpush1.bf16.msra.mxu1 %v3457_v55  ;;  %v539_v55 = vsub.s32 2, %v4059_v36 }
  0xc2   : > { %1981 = vmatprep.subr.bf16.mxu1 %v3465_v57  ;;  %v543_v57 = vsub.s32 3, %v4059_v36  ;;  %v3639_v36 = vld [vmem:[#allocation9 + $0x60] ss:$8 sps:$4 sm:$0xff]  }
  0xc3   : > { %1941 = vmatpush1.bf16.msra.mxu0 %v3436_v47 }
  0xc4   : > { %1942 = vmatprep.subr.bf16.mxu0 %v3444_v49 }
  0xc5   : > { %1982 = vmatpush1.bf16.msra.mxu1 %v3463_v59  ;;  %v540_v59 = vrot.slane %v527_v38, %v539_v55 }
  0xc6   : > { %1983 = vmatprep.subr.bf16.mxu1 %v3471_v61  ;;  %v544_v61 = vrot.slane %v527_v38, %v543_v57  ;;  %v3544_v38 = vld [vmem:[#allocation6 + $0x1e8] ss:$16 sps:$4 sm:$0xff]  }
  0xc7   : > { %1943 = vmatpush1.bf16.msra.mxu0 %v3442_v52  ;;  %v3499_v52 = vld [vmem:[#allocation6 + $0xe8] ss:$16 sps:$4 sm:$0xff]  }
  0xc8   : > { %1944 = vmatprep.subr.bf16.mxu0 %v3450_v54  ;;  %v3507_v54 = vld [vmem:[#allocation6 + $0xcc] ss:$16 sps:$4 sm:$0xff]  }
  0xc9   : > { %1984 = vmatpush1.bf16.msra.mxu1 %v3469_v63 }
  0xca   : > { %1985 = vmatprep.subr.bf16.mxu1 %v3477_v2  ;;  %v3519_v2 = vld [vmem:[#allocation6 + $0x8c] ss:$16 sps:$4 sm:$0xff]  }
  0xcb   : > { %1945 = vmatpush2.bf16.msra.mxu0 %v3448_v56  ;;  %v3505_v56 = vld [vmem:[#allocation6 + $0xc8] ss:$16 sps:$4 sm:$0xff]  }
  0xcc   : > { %1946 = vmatprep.subr.bf16.mxu0 %v3456_v58  ;;  %v3513_v58 = vld [vmem:[#allocation6 + $0xac] ss:$16 sps:$4 sm:$0xff]  }
  0xcd   : > { %1986 = vmatpush2.bf16.msra.mxu1 %v3475_v4 }
  0xce   : > { %1987 = vmatprep.subr.bf16.mxu1 %v3483_v6 }
  0xcf   : > { %1947 = vmatpush2.bf16.msra.mxu0 %v3454_v60 }
  0xd0   : > { %1948 = vmatprep.subr.bf16.mxu0 %v3462_v62  ;;  %v3511_v62 = vld [vmem:[#allocation6 + $0xa8] ss:$16 sps:$4 sm:$0xff]  }
  0xd1   : > { %1988 = vmatpush2.bf16.msra.mxu1 %v3481_v8  ;;  %v3517_v8 = vld [vmem:[#allocation6 + $0x88] ss:$16 sps:$4 sm:$0xff]  }
  0xd2   : > { %1989 = vmatprep.subr.bf16.mxu1 %v3489_v14 }
  0xd3   : > { %1949 = vmatpush2.bf16.msra.mxu0 %v3460_v0 }
  0xd4   : > { %1950 = vmatprep.subr.bf16.mxu0 %v3468_v3 }
  0xd5   : > { %1990 = vmatpush2.bf16.msra.mxu1 %v3487_v15 }
  0xd6   : > { %1991 = vmatprep.subr.bf16.mxu1 %v3495_v18 }
  0xd7   : > { %1951 = vmatpush2.bf16.msra.mxu0 %v3466_v5 }
  0xd8   : > { %1952 = vmatprep.subr.bf16.mxu0 %v3474_v7 }
  0xd9   : > { %1992 = vmatpush2.bf16.msra.mxu1 %v3493_v19  ;;  %v3523_v19 = vld [vmem:[#allocation6 + $0x2e8] ss:$16 sps:$4 sm:$0xff]  }
  0xda   : > { %1993 = vmatprep.subr.bf16.mxu1 %v3498_v23  ;;  %v3526_v23 = vld [vmem:[#allocation6 + $0x48] ss:$16 sps:$4 sm:$0xff]  }
  0xdb   : > { %1953 = vmatpush2.bf16.msra.mxu0 %v3472_v9 }
  0xdc   : > { %1954 = vmatprep.subr.bf16.mxu0 %v3480_v10 }
  0xdd   : > { %1994 = vmatpush2.bf16.msra.mxu1 %v3496_v21  ;;  %v3531_v21 = vld [vmem:[#allocation6 + $0x2cc] ss:$16 sps:$4 sm:$0xff]  }
  0xde   : > { %1995 = vmatprep.subr.bf16.mxu1 %v3504_v24  ;;  %v3534_v24 = vld [vmem:[#allocation6 + $0x2c] ss:$16 sps:$4 sm:$0xff]  }
  0xdf   : > { %1955 = vmatpush2.bf16.msra.mxu0 %v3478_v11  ;;  %v3522_v11 = vld [vmem:[#allocation6 + $0x6c] ss:$16 sps:$4 sm:$0xff]  }
  0xe0   : > { %1956 = vmatprep.subr.bf16.mxu0 %v3486_v12 }
  0xe1   : > { %1996 = vmatpush2.bf16.msra.mxu1 %v3502_v25  ;;  %v3529_v25 = vld [vmem:[#allocation6 + $0x2c8] ss:$16 sps:$4 sm:$0xff]  }
  0xe2   : > { %1997 = vmatprep.subr.bf16.mxu1 %v3510_v26  ;;  %v3537_v26 = vld [vmem:[#allocation6 + $0x2ac] ss:$16 sps:$4 sm:$0xff]  }
  0xe3   : > { %1957 = vmatpush2.bf16.msra.mxu0 %v3484_v13 }
  0xe4   : > { %1958 = vmatprep.subr.bf16.mxu0 %v3492_v16  ;;  %v3520_v16 = vld [vmem:[#allocation6 + $0x68] ss:$16 sps:$4 sm:$0xff]  }
  0xe5   : > { %1998 = vmatpush2.bf16.msra.mxu1 %v3508_v27  ;;  %v3532_v27 = vld [vmem:[#allocation6 + $0x28] ss:$16 sps:$4 sm:$0xff]  }
  0xe6   : > { %1999 = vmatprep.subr.bf16.mxu1 %v3516_v28  ;;  %v3540_v28 = vld [vmem:[#allocation6 + $0xc] ss:$16 sps:$4 sm:$0xff]  }
  0xe7   : > { %1959 = vmatpush2.bf16.msra.mxu0 %v3490_v17  ;;  %v3528_v17 = vld [vmem:[#allocation6 + $0x4c] ss:$16 sps:$4 sm:$0xff]  }
  0xe8   : > { %2010 = vmatprep.subr.bf16.mxu0 %v3501_v20 }
  0xe9   : > { %2000 = vmatpush2.bf16.msra.mxu1 %v3514_v29  ;;  %v3535_v29 = vld [vmem:[#allocation6 + $0x2a8] ss:$16 sps:$4 sm:$0xff]  }
  0xea   : > { %2051 = vmatprep.subr.bf16.mxu1 %v3525_v30  ;;  %v3543_v30 = vld [vmem:[#allocation6 + $0x28c] ss:$16 sps:$4 sm:$0xff]  }
 0x12c   : > { %v1041_v31 = vpop.f32.mrf.mxu1 }
 0x12e   : > { %v1043_v32 = vpop.f32.mrf.mxu1 }
 0x130   : > { %v1045_v33 = vpop.f32.mrf.mxu1 }
 0x131   : > { %v3541_v33 = vld [vmem:[#allocation6 + $0x288] ss:$16 sps:$4 sm:$0xff]  }
 0x132   : > { %v1046_v34 = vpop.f32.mrf.mxu1 }
 0x133   : > { %v3549_v34 = vld [vmem:[#allocation6 + $0x26c] ss:$16 sps:$4 sm:$0xff]  }
 0x15a   : > { %v1000_v41 = vpop.f32.mrf.mxu0 }
 0x15b   : > { %v1001_v42 = vadd.f32 %v1000_v41, %v532_v40  ;;  %v3552_v40 = vld [vmem:[#allocation6 + $0x1cc] ss:$16 sps:$4 sm:$0xff]  }
 0x15c   : > { %v1002_v43 = vpop.f32.mrf.mxu0  ;;  %v3555_v41 = vld [vmem:[#allocation6 + $0x24c] ss:$16 sps:$4 sm:$0xff]  }
 0x15d   : > { %v1042_v44 = vadd.f32 %v1041_v31, %v1001_v42  ;;  %v1003_v45 = vadd.f32 %v1002_v43, %v536_v22  ;;  %v3538_v31 = vld [vmem:[#allocation6 + $0x8] ss:$16 sps:$4 sm:$0xff]   ;;  %v3558_v43 = vld [vmem:[#allocation6 + $0x1ac] ss:$16 sps:$4 sm:$0xff]  }
 0x15e   : > { %v1004_v46 = vpop.f32.mrf.mxu0  ;;  %v3547_v22 = vld [vmem:[#allocation6 + $0x268] ss:$16 sps:$4 sm:$0xff]  }
 0x15f   : > { %v1044_v47 = vadd.f32 %v1043_v32, %v1003_v45  ;;  %v1130_v48 = vmax.f32 %v1042_v44, 0.0  ;;  %v3546_v32 = vld [vmem:[#allocation6 + $0x1ec] ss:$16 sps:$4 sm:$0xff]   ;;  %v3550_v42 = vld [vmem:[#allocation6 + $0x1c8] ss:$16 sps:$4 sm:$0xff]  }
 0x160   : > { %v1005_v49 = vpop.f32.mrf.mxu0  ;;  %v3553_v44 = vld [vmem:[#allocation6 + $0x248] ss:$16 sps:$4 sm:$0xff]   ;;  %v3561_v45 = vld [vmem:[#allocation6 + $0x22c] ss:$16 sps:$4 sm:$0xff]  }
 0x161   : > { %v1131_v50 = vmax.f32 %v1044_v47, 0.0  ;;  %v4072_v53 = vpack.c.bf16 %v1130_v48, %v1130_v48  ;;  %v3556_v46 = vld [vmem:[#allocation6 + $0x1a8] ss:$16 sps:$4 sm:$0xff]   ;;  %v3564_v47 = vld [vmem:[#allocation6 + $0x18c] ss:$16 sps:$4 sm:$0xff]  }
 0x162   : > { %v3559_v48 = vld [vmem:[#allocation6 + $0x228] ss:$16 sps:$4 sm:$0xff]   ;;  %v3567_v49 = vld [vmem:[#allocation6 + $0x20c] ss:$16 sps:$4 sm:$0xff]  }
 0x163   : > { %v1135_v51 = vpack.c.bf16 %v1131_v50, %v1131_v50  ;;  %v3562_v50 = vld [vmem:[#allocation6 + $0x188] ss:$16 sps:$4 sm:$0xff]  }
 0x165   : > { %1960 = vmatprep.mubr.bf16.mxu0 %v1135_v51 }
 0x166   : > { %1961 = vmatmul.mubr.bf16.vlgmr.msra.gmra.mxu0 %v4072_v53 }
 0x167   : > { %2011 = vmatpush1.bf16.msra.mxu0 %v3499_v52  ;;  %2042 = vmatprep.mubr.bf16.mxu0 %v1135_v51  ;;  %v3570_v51 = vld [vmem:[#allocation6 + $0x16c] ss:$16 sps:$4 sm:$0xff]   ;;  %v3565_v52 = vld [vmem:[#allocation6 + $0x208] ss:$16 sps:$4 sm:$0xff]  }
 0x168   : > { %2012 = vmatprep.subr.bf16.mxu0 %v3507_v54  ;;  %v3573_v54 = vld [vmem:[#allocation6 + $0x3ec] ss:$16 sps:$4 sm:$0xff]  }
 0x16a   : > { %v1123_v60 = vpop.f32.mrf.mxu0 }
 0x16b   : > { %2013 = vmatpush1.bf16.msra.mxu0 %v3505_v56  ;;  %v3568_v56 = vld [vmem:[#allocation6 + $0x168] ss:$16 sps:$4 sm:$0xff]  }
 0x16c   : > { %v1082_v63 = vpop.f32.mrf.mxu1  ;;  %v1125_v0 = vpop.f32.mrf.mxu0  ;;  %2014 = vmatprep.subr.bf16.mxu0 %v3513_v58  ;;  %v3576_v58 = vld [vmem:[#allocation6 + $0x14c] ss:$16 sps:$4 sm:$0xff]  }
 0x16d   : > { %v1083_v3 = vadd.f32 %v1082_v63, %v540_v59  ;;  %v3571_v59 = vld [vmem:[#allocation6 + $0x3e8] ss:$16 sps:$4 sm:$0xff]  }
 0x16e   : > { %v1084_v4 = vpop.f32.mrf.mxu1  ;;  %v1127_v5 = vpop.f32.mrf.mxu0  ;;  %v3577_v63 = vld [vmem:[#allocation6 + $0x3c8] ss:$16 sps:$4 sm:$0xff]  }
 0x16f   : > { %v1124_v6 = vadd.f32 %v1123_v60, %v1083_v3  ;;  %v1085_v7 = vadd.f32 %v1084_v4, %v544_v61  ;;  %2015 = vmatpush1.bf16.msra.mxu0 %v3511_v62  ;;  %v3579_v60 = vld [vmem:[#allocation6 + $0x3cc] ss:$16 sps:$4 sm:$0xff]   ;;  %v3574_v61 = vld [vmem:[#allocation6 + $0x148] ss:$16 sps:$4 sm:$0xff]  }
 0x170   : > { %v1086_v9 = vpop.f32.mrf.mxu1  ;;  %v1128_v10 = vpop.f32.mrf.mxu0  ;;  %2016 = vmatprep.subr.bf16.mxu0 %v3519_v2  ;;  %v3582_v62 = vld [vmem:[#allocation6 + $0x12c] ss:$16 sps:$4 sm:$0xff]   ;;  %v3580_v2 = vld [vmem:[#allocation6 + $0x128] ss:$16 sps:$4 sm:$0xff]  }
 0x171   : > { %v1126_v12 = vadd.f32 %v1125_v0, %v1085_v7  ;;  %v1132_v13 = vmax.f32 %v1124_v6, 0.0  ;;  %v3585_v0 = vld [vmem:[#allocation6 + $0x3ac] ss:$16 sps:$4 sm:$0xff]   ;;  %v3583_v4 = vld [vmem:[#allocation6 + $0x3a8] ss:$16 sps:$4 sm:$0xff]  }
 0x172   : > { %v1087_v14 = vpop.f32.mrf.mxu1  ;;  %v3588_v3 = vld [vmem:[#allocation6 + $0x10c] ss:$16 sps:$4 sm:$0xff]   ;;  %v3586_v6 = vld [vmem:[#allocation6 + $0x108] ss:$16 sps:$4 sm:$0xff]  }
 0x173   : > { %v1133_v15 = vmax.f32 %v1126_v12, 0.0  ;;  %2017 = vmatpush1.bf16.msra.mxu0 %v3517_v8  ;;  %v4081_v20 = vpack.c.bf16 %v1132_v13, %v1132_v13  ;;  %v3591_v5 = vld [vmem:[#allocation6 + $0x38c] ss:$16 sps:$4 sm:$0xff]   ;;  %v3589_v8 = vld [vmem:[#allocation6 + $0x388] ss:$16 sps:$4 sm:$0xff]   ;;  %v3607_v14 = vld [vmem:[#allocation8 + $0x30] sm:$0xff]  }
 0x174   : > { %2018 = vmatprep.subr.bf16.mxu0 %v3522_v11  ;;  %v3604_v7 = vld [vmem:[#allocation8 + $0x78] sm:$0xff]   ;;  %v3606_v11 = vld [vmem:[#allocation8 + $0x70] sm:$0xff]  }
 0x175   : > { %v1137_v18 = vpack.c.bf16 %v1133_v15, %v1133_v15  ;;  %v3594_v9 = vld [vmem:[#allocation6 + $0x36c] ss:$16 sps:$4 sm:$0xff]   ;;  %v3592_v12 = vld [vmem:[#allocation6 + $0x368] ss:$16 sps:$4 sm:$0xff]  }
 0x176   : > { %v3605_v10 = vld [vmem:[#allocation8 + $0x38] sm:$0xff]  }
 0x177   : > { %2001 = vmatprep.mubr.bf16.mxu1 %v1137_v18  ;;  %2019 = vmatpush1.bf16.msra.mxu0 %v3520_v16  ;;  %v3597_v13 = vld [vmem:[#allocation6 + $0x34c] ss:$16 sps:$4 sm:$0xff]   ;;  %v3595_v15 = vld [vmem:[#allocation6 + $0x348] ss:$16 sps:$4 sm:$0xff]  }
 0x178   : > { %2002 = vmatmul.mubr.bf16.vlgmr.msra.gmra.mxu1 %v4081_v20  ;;  %2020 = vmatprep.subr.bf16.mxu0 %v3528_v17  ;;  %v3608_v16 = vld [vmem:[#allocation8 + $0x68] sm:$0xff]  }
 0x179   : > { %2052 = vmatpush1.bf16.msra.mxu1 %v3523_v19  ;;  %2083 = vmatprep.mubr.bf16.mxu1 %v1137_v18  ;;  %v3600_v17 = vld [vmem:[#allocation6 + $0x32c] ss:$16 sps:$4 sm:$0xff]   ;;  %v3610_v19 = vld [vmem:[#allocation8 + $0x60] sm:$0xff]  }
 0x17a   : > { %2053 = vmatprep.subr.bf16.mxu1 %v3531_v21  ;;  %v3609_v18 = vld [vmem:[#allocation8 + $0x28] sm:$0xff]  }
 0x17b   : > { %2021 = vmatpush1.bf16.msra.mxu0 %v3526_v23  ;;  %v3598_v21 = vld [vmem:[#allocation6 + $0x328] ss:$16 sps:$4 sm:$0xff]   ;;  %v3603_v23 = vld [vmem:[#allocation6 + $0x30c] ss:$16 sps:$4 sm:$0xff]  }
 0x17c   : > { %2022 = vmatprep.subr.bf16.mxu0 %v3534_v24  ;;  %v3612_v24 = vld [vmem:[#allocation8 + $0x58] sm:$0xff]  }
 0x17d   : > { %2054 = vmatpush1.bf16.msra.mxu1 %v3529_v25  ;;  %v3601_v25 = vld [vmem:[#allocation6 + $0x308] ss:$16 sps:$4 sm:$0xff]  }
 0x17e   : > { %2055 = vmatprep.subr.bf16.mxu1 %v3537_v26  ;;  %v3613_v26 = vld [vmem:[#allocation8 + $0x18] sm:$0xff]  }
 0x17f   : > { %2023 = vmatpush1.bf16.msra.mxu0 %v3532_v27  ;;  %v3614_v27 = vld [vmem:[#allocation8 + $0x50] sm:$0xff]  }
 0x180   : > { %2024 = vmatprep.subr.bf16.mxu0 %v3540_v28  ;;  %v3615_v28 = vld [vmem:[#allocation8 + $0x10] sm:$0xff]  }
 0x181   : > { %2056 = vmatpush1.bf16.msra.mxu1 %v3535_v29  ;;  %v3616_v29 = vld [vmem:[#allocation8 + $0x48] sm:$0xff]  }
 0x182   : > { %2057 = vmatprep.subr.bf16.mxu1 %v3543_v30  ;;  %v3617_v30 = vld [vmem:[#allocation8 + $0x8] sm:$0xff]  }
 0x183   : > { %2025 = vmatpush1.bf16.msra.mxu0 %v3538_v31  ;;  %v3618_v31 = vld [vmem:[#allocation8 + $0x40] sm:$0xff]  }
 0x184   : > { %2026 = vmatprep.subr.bf16.mxu0 %v3546_v32  ;;  %v3619_v32 = vld [vmem:[#allocation8] sm:$0xff]  }
 0x185   : > { %2058 = vmatpush1.bf16.msra.mxu1 %v3541_v33  ;;  %v3620_v33 = vld [vmem:[#allocation8 + $0xf8] sm:$0xff]  }
 0x186   : > { %2059 = vmatprep.subr.bf16.mxu1 %v3549_v34  ;;  %v3621_v34 = vld [vmem:[#allocation8 + $0xb8] sm:$0xff]  }
 0x187   : > { %2027 = vmatpush2.bf16.msra.mxu0 %v3544_v38  ;;  %v3622_v38 = vld [vmem:[#allocation8 + $0xf0] sm:$0xff]  }
 0x188   : > { %2028 = vmatprep.subr.bf16.mxu0 %v3552_v40  ;;  %v3623_v40 = vld [vmem:[#allocation8 + $0xb0] sm:$0xff]  }
 0x189   : > { %2060 = vmatpush1.bf16.msra.mxu1 %v3547_v22  ;;  %v3624_v22 = vld [vmem:[#allocation8 + $0xe8] sm:$0xff]  }
 0x18a   : > { %2061 = vmatprep.subr.bf16.mxu1 %v3555_v41  ;;  %v3626_v41 = vld [vmem:[#allocation8 + $0xe0] sm:$0xff]  }
 0x18b   : > { %2029 = vmatpush2.bf16.msra.mxu0 %v3550_v42  ;;  %v3627_v42 = vld [vmem:[#allocation8 + $0xa0] sm:$0xff]  }
 0x18c   : > { %2030 = vmatprep.subr.bf16.mxu0 %v3558_v43  ;;  %v3628_v43 = vld [vmem:[#allocation8 + $0xd8] sm:$0xff]  }
 0x18d   : > { %2062 = vmatpush1.bf16.msra.mxu1 %v3553_v44  ;;  %v3629_v44 = vld [vmem:[#allocation8 + $0x98] sm:$0xff]  }
 0x18e   : > { %2063 = vmatprep.subr.bf16.mxu1 %v3561_v45  ;;  %v3630_v45 = vld [vmem:[#allocation8 + $0xd0] sm:$0xff]  }
 0x18f   : > { %2031 = vmatpush2.bf16.msra.mxu0 %v3556_v46  ;;  %v3631_v46 = vld [vmem:[#allocation8 + $0x90] sm:$0xff]  }
 0x190   : > { %2032 = vmatprep.subr.bf16.mxu0 %v3564_v47  ;;  %v3632_v47 = vld [vmem:[#allocation8 + $0xc8] sm:$0xff]  }
 0x191   : > { %2064 = vmatpush1.bf16.msra.mxu1 %v3559_v48  ;;  %v3633_v48 = vld [vmem:[#allocation8 + $0x88] sm:$0xff]  }
 0x192   : > { %2065 = vmatprep.subr.bf16.mxu1 %v3567_v49  ;;  %v3634_v49 = vld [vmem:[#allocation8 + $0xc0] sm:$0xff]  }
 0x193   : > { %2033 = vmatpush2.bf16.msra.mxu0 %v3562_v50  ;;  %v3635_v50 = vld [vmem:[#allocation8 + $0x80] sm:$0xff]  }
 0x194   : > { %2034 = vmatprep.subr.bf16.mxu0 %v3570_v51 }
 0x195   : > { %2066 = vmatpush1.bf16.msra.mxu1 %v3565_v52 }
 0x196   : > { %2067 = vmatprep.subr.bf16.mxu1 %v3573_v54 }
 0x197   : > { %2035 = vmatpush2.bf16.msra.mxu0 %v3568_v56 }
 0x198   : > { %2036 = vmatprep.subr.bf16.mxu0 %v3576_v58  ;;  %v1266_v58 = vld [vmem:[%s4173_s4] sm:$0xf] }
 0x199   : > { %2068 = vmatpush2.bf16.msra.mxu1 %v3571_v59  ;;  %v1271_v59 = vrot.slane %v1266_v58, %v4062_v37 }
 0x19a   : > { %2069 = vmatprep.subr.bf16.mxu1 %v3579_v60  ;;  %v1275_v60 = vrot.slane %v1266_v58, %v4068_v39 }
 0x19b   : > { %2037 = vmatpush2.bf16.msra.mxu0 %v3574_v61 }
 0x19c   : > { %2038 = vmatprep.subr.bf16.mxu0 %v3582_v62 }
 0x19d   : > { %2070 = vmatpush2.bf16.msra.mxu1 %v3577_v63 }
 0x19e   : > { %2071 = vmatprep.subr.bf16.mxu1 %v3585_v0 }
 0x19f   : > { %2039 = vmatpush2.bf16.msra.mxu0 %v3580_v2 }
 0x1a0   : > { %2040 = vmatprep.subr.bf16.mxu0 %v3588_v3 }
 0x1a1   : > { %2072 = vmatpush2.bf16.msra.mxu1 %v3583_v4 }
 0x1a2   : > { %2073 = vmatprep.subr.bf16.mxu1 %v3591_v5 }
 0x1a3   : > { %2041 = vmatpush2.bf16.msra.mxu0 %v3586_v6 }
 0x1a4   : > { %3127 = vmatprep.subr.bf16.mxu0 %v3604_v7 }
 0x1a5   : > { %2074 = vmatpush2.bf16.msra.mxu1 %v3589_v8 }
 0x1a6   : > { %2043 = vmatmul.mubr.bf16.vlgmr.msra.gmra.mxu0 %v4072_v53  ;;  %2075 = vmatprep.subr.bf16.mxu1 %v3594_v9  ;;  %v3611_v53 = vld [vmem:[#allocation8 + $0x20] sm:$0xff]  }
 0x1a7   : > { %3128 = vmatpush3.bf16.msra.mxu0 %v3605_v10 }
 0x1a8   : > { %3129 = vmatprep.subr.bf16.mxu0 %v3606_v11 }
 0x1a9   : > { %2076 = vmatpush2.bf16.msra.mxu1 %v3592_v12 }
 0x1aa   : > { %2077 = vmatprep.subr.bf16.mxu1 %v3597_v13 }
 0x1ab   : > { %3130 = vmatpush3.bf16.msra.mxu0 %v3607_v14  ;;  %v1279_v14 = vrot.slane %v1266_v58, %v539_v55  ;;  %v3641_v55 = vld [vmem:[#allocation9 + $0x64] ss:$8 sps:$4 sm:$0xff]  }
 0x1ac   : > { %3131 = vmatprep.subr.bf16.mxu0 %v3608_v16 }
 0x1ad   : > { %2078 = vmatpush2.bf16.msra.mxu1 %v3595_v15  ;;  %v1283_v15 = vrot.slane %v1266_v58, %v543_v57  ;;  %v3644_v57 = vld [vmem:[#allocation9 + $0x54] ss:$8 sps:$4 sm:$0xff]   ;;  %v3065_v58 = vld [vmem:[%s4175_s6] ss:$0 sm:$0xff] }
 0x1ae   : > { %2079 = vmatprep.subr.bf16.mxu1 %v3600_v17 }
 0x1af   : > { %3132 = vmatpush3.bf16.msra.mxu0 %v3609_v18 }
 0x1b0   : > { %3133 = vmatprep.subr.bf16.mxu0 %v3610_v19 }
 0x1b1   : > { %2080 = vmatpush2.bf16.msra.mxu1 %v3598_v21 }
 0x1b2   : > { %2081 = vmatprep.subr.bf16.mxu1 %v3603_v23 }
 0x1b3   : > { %3134 = vmatpush3.bf16.msra.mxu0 %v3611_v53 }
 0x1b4   : > { %3135 = vmatprep.subr.bf16.mxu0 %v3612_v24 }
 0x1b5   : > { %2082 = vmatpush2.bf16.msra.mxu1 %v3601_v25 }
 0x1b6   : > { %3149 = vmatprep.subr.bf16.mxu1 %v3620_v33  ;;  %v3650_v33 = vld [vmem:[#allocation9 + $0x34] ss:$8 sps:$4 sm:$0xff]  }
 0x1b7   : > { %3136 = vmatpush3.bf16.msra.mxu0 %v3613_v26 }
 0x1b8   : > { %2084 = vmatmul.mubr.bf16.vlgmr.msra.gmra.mxu1 %v4081_v20  ;;  %3137 = vmatprep.subr.bf16.mxu0 %v3614_v27  ;;  %v3625_v20 = vld [vmem:[#allocation8 + $0xa8] sm:$0xff]  }
 0x1b9   : > { %3150 = vmatpush3.bf16.msra.mxu1 %v3621_v34  ;;  %v3648_v34 = vld [vmem:[#allocation9 + $0x30] ss:$8 sps:$4 sm:$0xff]  }
 0x1ba   : > { %3151 = vmatprep.subr.bf16.mxu1 %v3622_v38  ;;  %v3653_v38 = vld [vmem:[#allocation9 + $0x24] ss:$8 sps:$4 sm:$0xff]  }
 0x1bb   : > { %3138 = vmatpush3.bf16.msra.mxu0 %v3615_v28  ;;  %v3636_v28 = vld [vmem:[#allocation9 + $0x70] ss:$8 sps:$4 sm:$0xff]  }
 0x1bc   : > { %3139 = vmatprep.subr.bf16.mxu0 %v3616_v29  ;;  %v3638_v29 = vld [vmem:[#allocation9 + $0x74] ss:$8 sps:$4 sm:$0xff]  }
 0x1bd   : > { %3152 = vmatpush3.bf16.msra.mxu1 %v3623_v40  ;;  %v3651_v40 = vld [vmem:[#allocation9 + $0x20] ss:$8 sps:$4 sm:$0xff]  }
 0x1be   : > { %3153 = vmatprep.subr.bf16.mxu1 %v3624_v22  ;;  %v3656_v22 = vld [vmem:[#allocation9 + $0x14] ss:$8 sps:$4 sm:$0xff]  }
 0x1bf   : > { %3140 = vmatpush3.bf16.msra.mxu0 %v3617_v30  ;;  %v3642_v30 = vld [vmem:[#allocation9 + $0x50] ss:$8 sps:$4 sm:$0xff]  }
 0x1c0   : > { %3141 = vmatprep.subr.bf16.mxu0 %v3618_v31  ;;  %v3647_v31 = vld [vmem:[#allocation9 + $0x44] ss:$8 sps:$4 sm:$0xff]  }
 0x1c1   : > { %3154 = vmatpush3.bf16.msra.mxu1 %v3625_v20  ;;  %v3654_v20 = vld [vmem:[#allocation9 + $0x10] ss:$8 sps:$4 sm:$0xff]  }
 0x1c2   : > { %3155 = vmatprep.subr.bf16.mxu1 %v3626_v41  ;;  %v3659_v41 = vld [vmem:[#allocation9 + $0x4] ss:$8 sps:$4 sm:$0xff]  }
 0x1c3   : > { %3142 = vmatpush3.bf16.msra.mxu0 %v3619_v32  ;;  %v3645_v32 = vld [vmem:[#allocation9 + $0x40] ss:$8 sps:$4 sm:$0xff]  }
 0x1c4   : > { %2553 = vmatprep.subr.bf16.mxu0 %v3638_v29 }
 0x1c5   : > { %3156 = vmatpush3.bf16.msra.mxu1 %v3627_v42  ;;  %v3657_v42 = vld [vmem:[#allocation9] ss:$8 sps:$4 sm:$0xff]  }
 0x1c6   : > { %3157 = vmatprep.subr.bf16.mxu1 %v3628_v43  ;;  %v3660_v43 = vld [vmem:[%s4178_s9 + $0x38] sm:$0xff]  }
 0x1c9   : > { %3158 = vmatpush3.bf16.msra.mxu1 %v3629_v44  ;;  %v3861_v44 = vmov 0.0  }
 0x1ca   : > { %3159 = vmatprep.subr.bf16.mxu1 %v3630_v45  ;;  %v3661_v45 = vld [vmem:[%s4178_s9 + $0x30] sm:$0xff]  }
 0x1cd   : > { %3160 = vmatpush3.bf16.msra.mxu1 %v3631_v46  ;;  %v3662_v46 = vld [vmem:[%s4178_s9 + $0x28] sm:$0xff]  }
 0x1ce   : > { %3161 = vmatprep.subr.bf16.mxu1 %v3632_v47  ;;  %v3663_v47 = vld [vmem:[%s4178_s9 + $0x20] sm:$0xff]  }
 0x1d1   : > { %3162 = vmatpush3.bf16.msra.mxu1 %v3633_v48  ;;  %v3664_v48 = vld [vmem:[%s4178_s9 + $0x18] sm:$0xff]  }
 0x1d2   : > { %3163 = vmatprep.subr.bf16.mxu1 %v3634_v49  ;;  %v3665_v49 = vld [vmem:[%s4178_s9 + $0x10] sm:$0xff]  }
 0x1d5   : > { %3164 = vmatpush3.bf16.msra.mxu1 %v3635_v50 }
 0x1d6   : > { %3180 = vmatprep.subr.bf16.mxu1 %v3861_v44 }
 0x226   : > { %v1962_v51 = vpop.f32.mrf.mxu0 }
 0x227   : > { %v1963_v61 = vadd.f32 %v1962_v51, %v1271_v59 }
 0x228   : > { %v1964_v52 = vpop.f32.mrf.mxu0 }
 0x229   : > { %v1965_v63 = vadd.f32 %v1964_v52, %v1275_v60 }
 0x22a   : > { %v1966_v54 = vpop.f32.mrf.mxu0 }
 0x22c   : > { %v1967_v56 = vpop.f32.mrf.mxu0 }
 0x238   : > { %v2003_v62 = vpop.f32.mrf.mxu1 }
 0x239   : > { %v2004_v0 = vadd.f32 %v2003_v62, %v1963_v61 }
 0x23a   : > { %v2005_v2 = vpop.f32.mrf.mxu1 }
 0x23b   : > { %v2006_v3 = vadd.f32 %v2005_v2, %v1965_v63  ;;  %v2092_v4 = vmax.f32 %v2004_v0, 0.0 }
 0x23c   : > { %v2007_v5 = vpop.f32.mrf.mxu1 }
 0x23d   : > { %v2093_v6 = vmax.f32 %v2006_v3, 0.0  ;;  %v2096_v9 = vpack.c.bf16 %v2092_v4, %v2092_v4  ;;  %v3666_v5 = vld [vmem:[%s4178_s9 + $0x8] sm:$0xff]  }
 0x23e   : > { %v2008_v7 = vpop.f32.mrf.mxu1 }
 0x23f   : > { %v2097_v8 = vpack.c.bf16 %v2093_v6, %v2093_v6  ;;  %v3667_v6 = vld [vmem:[%s4178_s9] sm:$0xff]  }
 0x240   : > { %v2461_v7 = vld [vmem:[%s4177_s8] sm:$0x3] }
 0x241   : > { %2395 = vmatprep.mubr.bf16.mxu0 %v2097_v8  ;;  %v2466_v8 = vrot.slane %v2461_v7, %v4062_v37 }
 0x242   : > { %2396 = vmatmul.mubr.bf16.vlgmr.msra.gmra.mxu0 %v2096_v9 }
 0x243   : > { %2585 = vmatprep.mubr.bf16.mxu0 %v3860_v1  ;;  %2554 = vmatpush1.bf16.msra.mxu0 %v3636_v28 }
 0x244   : > { %2555 = vmatprep.subr.bf16.mxu0 %v3641_v55 }
 0x247   : > { %2556 = vmatpush1.bf16.msra.mxu0 %v3639_v36 }
 0x248   : > { %2557 = vmatprep.subr.bf16.mxu0 %v3644_v57 }
 0x24b   : > { %2558 = vmatpush1.bf16.msra.mxu0 %v3642_v30 }
 0x24c   : > { %2559 = vmatprep.subr.bf16.mxu0 %v3647_v31 }
 0x24f   : > { %2560 = vmatpush1.bf16.msra.mxu0 %v3645_v32 }
 0x250   : > { %2561 = vmatprep.subr.bf16.mxu0 %v3650_v33 }
 0x253   : > { %2562 = vmatpush1.bf16.msra.mxu0 %v3648_v34 }
 0x254   : > { %2563 = vmatprep.subr.bf16.mxu0 %v3653_v38 }
 0x257   : > { %2564 = vmatpush1.bf16.msra.mxu0 %v3651_v40 }
 0x258   : > { %2565 = vmatprep.subr.bf16.mxu0 %v3656_v22 }
 0x25b   : > { %2566 = vmatpush1.bf16.msra.mxu0 %v3654_v20 }
 0x25c   : > { %2567 = vmatprep.subr.bf16.mxu0 %v3659_v41 }
 0x25f   : > { %2568 = vmatpush1.bf16.msra.mxu0 %v3657_v42 }
 0x266   : > { %v2044_v10 = vpop.f32.mrf.mxu0 }
 0x267   : > { %v2045_v16 = vadd.f32 %v2044_v10, %v1279_v14 }
 0x268   : > { %v2046_v11 = vpop.f32.mrf.mxu0 }
 0x269   : > { %v2047_v18 = vadd.f32 %v2046_v11, %v1283_v15 }
 0x26a   : > { %v2048_v12 = vpop.f32.mrf.mxu0 }
 0x26c   : > { %v2049_v13 = vpop.f32.mrf.mxu0 }
 0x278   : > { %v2085_v17 = vpop.f32.mrf.mxu1 }
 0x279   : > { %v2086_v19 = vadd.f32 %v2085_v17, %v2045_v16  ;;  %v3114_v16 = vld [vmem:[#allocation2] ss:$0 sm:$0xff] }
 0x27a   : > { %v2087_v21 = vpop.f32.mrf.mxu1 }
 0x27b   : > { %v2088_v23 = vadd.f32 %v2087_v21, %v2047_v18  ;;  %v2094_v53 = vmax.f32 %v2086_v19, 0.0 }
 0x27c   : > { %v2089_v24 = vpop.f32.mrf.mxu1 }
 0x27d   : > { %v2095_v25 = vmax.f32 %v2088_v23, 0.0  ;;  %v2098_v27 = vpack.c.bf16 %v2094_v53, %v2094_v53 }
 0x27e   : > { %v2090_v1 = vpop.f32.mrf.mxu1 }
 0x27f   : > { %v2099_v26 = vpack.c.bf16 %v2095_v25, %v2095_v25 }
 0x281   : > { %2435 = vmatprep.mubr.bf16.mxu1 %v2099_v26  ;;  %v2713_v26 = vand.u32 127, %v529_v35 }
 0x282   : > { %2436 = vmatmul.mubr.bf16.vlgmr.msra.gmra.mxu1 %v2098_v27  ;;  %v2470_v27 = vrot.slane %v2461_v7, %v4068_v39 }
 0x283   : > { %3181 = vmatpush3.bf16.msra.mxu1 %v3660_v43  ;;  %3196 = vmatprep.mubr.msk.bf16.mxu1 %vm3862_vm2, %v3861_v44  ;;  %vm2714_vm3 = vcmp.eq.s32.totalorder %v2713_v26, 3 }
 0x284   : > { %3182 = vmatprep.subr.bf16.mxu1 %v3861_v44 }
 0x287   : > { %3183 = vmatpush3.bf16.msra.mxu1 %v3661_v45 }
 0x288   : > { %3184 = vmatprep.subr.bf16.mxu1 %v3861_v44 }
 0x28b   : > { %3185 = vmatpush3.bf16.msra.mxu1 %v3662_v46 }
 0x28c   : > { %3186 = vmatprep.subr.bf16.mxu1 %v3861_v44 }
 0x28f   : > { %3187 = vmatpush3.bf16.msra.mxu1 %v3663_v47 }
 0x290   : > { %3188 = vmatprep.subr.bf16.mxu1 %v3861_v44 }
 0x293   : > { %3189 = vmatpush3.bf16.msra.mxu1 %v3664_v48 }
 0x294   : > { %3190 = vmatprep.subr.bf16.mxu1 %v3861_v44 }
 0x297   : > { %3191 = vmatpush3.bf16.msra.mxu1 %v3665_v49 }
 0x298   : > { %3192 = vmatprep.subr.bf16.mxu1 %v3861_v44 }
 0x29b   : > { %3193 = vmatpush3.bf16.msra.mxu1 %v3666_v5 }
 0x29c   : > { %3194 = vmatprep.subr.bf16.mxu1 %v3861_v44 }
 0x29f   : > { %3195 = vmatpush3.bf16.msra.mxu1 %v3667_v6 }
 0x302   : > { %v3143_v50 = vpop.f32.mrf.mxu0 }
 0x304   : > { %v3144_v51 = vpop.f32.mrf.mxu0 }
 0x305   : > { %v3145_v56 = vadd.f32 %v3144_v51, %v3143_v50 }
 0x306   : > { %v3146_v52 = vpop.f32.mrf.mxu0 }
 0x307   : > { %v2398_v61 = vadd.f32 %v3145_v56, %v3065_v58 }
 0x308   : > { %v3147_v54 = vpop.f32.mrf.mxu0 }
 0x342   : > { %v3165_v59 = vpop.f32.mrf.mxu1 }
 0x344   : > { %v3166_v60 = vpop.f32.mrf.mxu1 }
 0x345   : > { %v3167_v62 = vadd.f32 %v3166_v60, %v3165_v59 }
 0x346   : > { %v3168_v63 = vpop.f32.mrf.mxu1 }
 0x347   : > { %v2438_v0 = vadd.f32 %v3167_v62, %v2398_v61 }
 0x348   : > { %v3169_v2 = vpop.f32.mrf.mxu1 }
 0x349   : > { %v2443_v3 = vmax.f32 %v2438_v0, 0.0 }
 0x34b   : > { %v2444_v4 = vpack.c.bf16 %v2443_v3, %v2443_v3 }
 0x34d   : > { %2586 = vmatmul.mubr.bf16.vlgmr.msra.gmra.mxu0 %v2444_v4 }
 0x40d   : > { %v2587_v9 = vpop.f32.mrf.mxu0 }
 0x40e   : > { %v2588_v10 = vadd.f32 %v2587_v9, %v2466_v8 }
 0x40f   : > { %v2589_v11 = vpop.f32.mrf.mxu0 }
 0x410   : > { %v2594_v12 = vmax.f32 %v2588_v10, 0.0  ;;  %v2590_v28 = vadd.f32 %v2589_v11, %v2470_v27 }
 0x411   : > { %v2591_v13 = vpop.f32.mrf.mxu0 }
 0x412   : > { %v2595_v14 = vpack.c.bf16 %v2594_v12, %v2594_v12 }
 0x413   : > { %v2592_v15 = vpop.f32.mrf.mxu0 }
 0x414   : > { %3197 = vmatmul.mubr.bf16.vlgmr.msra.gmra.mxu1 %v2595_v14 }
 0x4d4   : > { %v2701_v17 = vpop.f32.mrf.mxu1 }
 0x4d5   : > { %v2702_v18 = vadd.f32 %v3114_v16, %v2701_v17 }
 0x4d6   : > { %v3198_v19 = vpop.f32.mrf.mxu1 }
 0x4d7   : > { %v2707_v21 = vsub.f32 0.0, %v2702_v18 }
 0x4d8   : > { %v2704_v23 = vpop.f32.mrf.mxu1 }
 0x4d9   : > { %v2708_v53 = vmul.f32 1.442695, %v2707_v21 }
 0x4da   : > { %v3199_v24 = vpop.f32.mrf.mxu1 }
 0x4db   : > { %3668 = vpow2.f32 %v2708_v53 }
 0x4e8   : > { %v3669_v37 = vpop.eup %3668 }
 0x4e9   : > { %v2710_v25 = vadd.f32 1.0, %v3669_v37 }
 0x4eb   : > { %3670 = vrcp.f32 %v2710_v25 }
 0x4f8   : > { %v3671_v1 = vpop.eup %3670 }
 0x4f9   : > { %2717 = vperm.xlu0 %3290, %v3671_v1  }
 0x574   : > { %v2718_v29 = vpop.permute.xlu0 %2717 }
 0x575   : > { %v2720_v55 = vsel %vm2714_vm3, %v2718_v29, %v2590_v28 }
 0x576   : > { %2721 = vst [vmem:[%s440_s23] sm:$0xff] %v2720_v55 }
 0x577   : > { %3789 = shalt.err (!%p3786_p8)
}
 0x578   : > { %s3790_s25 = scalar_lea.hbm %s4134_s30, 128  ;;  %s3794_s23 = scalar_lea.hbm %s4180_s11, 384 }
 0x579   : > { %p3791_p13 = scmp.ne.s32.totalorder %s4134_s30, %s3790_s25  ;;  %p3795_p6 = scmp.lt.s32.totalorder %s4134_s30, %s4180_s11 }
 0x57a   : > { %p3796_p12 = scmp.lt.s32.totalorder %s3794_s23, %s3790_s25 }
 0x57b   : > { %p3792_p11 = pnand %p3791_p13, %p4194_p1 }
 0x57c   : > { %p3797_p10 = por %p3796_p12, %p3795_p6 }
 0x57d   : > { %p3793_p0 = pneg %p3792_p11 }
 0x57f   : > { %p3798_p9 = pnand %p3797_p10, %p3793_p0 }
 0x581   : > { %3801 = shalt.err (!%p3798_p9)
}
 0x582   : > { %3217 = dma.vmem_to_hbm [thread:$0]  (%p4194_p1), %s2737_s13, 128, %s4134_s30, %s2723_s14  }
 0x583 PF: > { %p3244_p3 = scmp.ge.s32.totalorder %s3848_s22, 2  ;;  %s2748_s12 = sand.u32 1, %s3836_s19  }
 0x584   : > { %p4195_p5 = scmp.ne.s32.totalorder %s4185_s29, 0  ;;  %s2749_s10 = scalar_lea.sflag [#allocation5], %s2748_s12 }
 0x586   : > { %p3233_p2 = pnand %p3244_p3, %p4195_p5 }
 0x588   : > { %p3234_p4 = pneg %p3233_p2 }
 0x58a   : > { %3831 = dma.done.wait (%p3234_p4), %s2749_s10, 128  }
 0x58b   : > { %3833 = vsyncadd (%p3234_p4), %s2749_s10, 4294967168  ;;  %s4196_s15 = sld [smem:[#allocation16_spill]]  ;;  %p26_p7 = scmp.ge.s32.totalorder %s3952_s24, 5  }
 0x58c   : > { %s4197_s19 = smov %s3840_s20  ;;  %s4198_s20 = smov %s3844_s21 }
 0x58d   : > { %s4200_s22 = smov %s3952_s24  ;;  %28 = sbr.rel (!%p26_p7) target bundleno = 9 (0x9), region = 116 }
 0x591   : > { %s4199_s21 = smov %s4196_s15 }
 0x592   :  { %2754 = vsyncpa [#allocation4], 1 }
 0x593   :  { %2756 = vsyncpa [#allocation4 + $0x1], 1 }
 0x594   :  { %2757 = vsyncpa [#allocation7], 1 }
 0x595   :  { %2758 = vsyncpa [#allocation10], 1 }
 0x596   :  { %2759 = vsyncpa [#allocation5], 1 }
 0x597   :  { %2761 = vsyncpa [#allocation5 + $0x1], 1 }

</bundles_post_ra>
